<compile_context>
chip_gen: v5e
topology: v5e:2x2
jax: 0.10.0
libtpu: 0.0.40
codegen_flags: <defaults>
</compile_context>

<pallas_src>
import jax
import jax.numpy as jnp
from jax.experimental import pallas as pl
from jax.experimental.pallas import tpu as pltpu

HIDDEN_DIM = 768
L1_OUT = 256
N_CLASSES = 2


# ---------------------------------------------------------------------------
# Pallas kernel: (bug, fix) -> Linear -> ReLU -> Linear
# ---------------------------------------------------------------------------
def _head_kernel(bug_ref, fix_ref, w1a_ref, w1b_ref, b1_ref, w2_ref, b2_ref,
                 logits_ref):
    # l1: concat(bug, fix) @ w1 == bug @ w1a + fix @ w1b  (bf16 MXU, f32 acc)
    h = jnp.dot(bug_ref[...], w1a_ref[...],
                preferred_element_type=jnp.float32)
    h = h + jnp.dot(fix_ref[...], w1b_ref[...],
                    preferred_element_type=jnp.float32)
    h = h + b1_ref[...]
    h = jnp.maximum(h, 0.0)                               # ReLU

    # l2: [TB, 256] @ [256, 2] + [1, 2]   (tiny; stays f32)
    logits_ref[...] = jnp.dot(h, w2_ref[...],
                              preferred_element_type=jnp.float32) + b2_ref[...]


def prepare_head_params(w1, b1, w2, b2):
    """One-time parameter prep: split w1 (removes in-kernel concat) and cast
    the large l1 weights to bf16 once, instead of per forward call."""
    return {
        "w1a": w1[:HIDDEN_DIM].astype(jnp.bfloat16),       # [768, 256]
        "w1b": w1[HIDDEN_DIM:].astype(jnp.bfloat16),        # [768, 256]
        "b1": b1.astype(jnp.float32),                        # [1, 256]
        "w2": w2.astype(jnp.float32),                        # [256, 2]
        "b2": b2.astype(jnp.float32),                        # [1, 2]
    }


def patch_classifier_head(bug_out, fix_out, head, *, block_b=1024):
    """Pallas wrapper for the classifier head.

    bug_out, fix_out : [B, HIDDEN_DIM] float32 CLS embeddings
    head             : dict from prepare_head_params
    Returns logits [B, 2] (float32).
    """
    B = bug_out.shape[0]

    # bf16 activations: halves input DMA bytes on a bandwidth-bound kernel.
    bug_bf = bug_out.astype(jnp.bfloat16)
    fix_bf = fix_out.astype(jnp.bfloat16)

    # Pad only to a multiple of 16 sublanes (bf16 packing), never to TB.
    B16 = pl.cdiv(B, 16) * 16
    if B16 != B:
        pad = B16 - B
        bug_bf = jnp.pad(bug_bf, ((0, pad), (0, 0)))
        fix_bf = jnp.pad(fix_bf, ((0, pad), (0, 0)))

    # Batch tile: aim for >= 2 grid steps (keeps both v7x TensorCores busy),
    # capped at block_b, multiple of 16 sublanes.
    TB = min(block_b, max(16, pl.cdiv(pl.cdiv(B16, 2), 16) * 16))
    grid = (pl.cdiv(B16, TB),)          # ragged last block handled by Pallas

    flops = 2 * B16 * (2 * HIDDEN_DIM) * L1_OUT + 2 * B16 * L1_OUT * N_CLASSES
    bytes_accessed = (2 * B16 * HIDDEN_DIM * 2          # bf16 activations in
                      + 2 * HIDDEN_DIM * L1_OUT * 2     # w1a + w1b (bf16)
                      + L1_OUT * 4                      # b1
                      + L1_OUT * N_CLASSES * 4          # w2
                      + N_CLASSES * 4                   # b2
                      + B16 * N_CLASSES * 4)            # logits out

    logits = pl.pallas_call(
        _head_kernel,
        out_shape=jax.ShapeDtypeStruct((B16, N_CLASSES), jnp.float32),
        grid=grid,
        in_specs=[
            pl.BlockSpec((TB, HIDDEN_DIM), lambda i: (i, 0)),      # bug (bf16)
            pl.BlockSpec((TB, HIDDEN_DIM), lambda i: (i, 0)),      # fix (bf16)
            pl.BlockSpec((HIDDEN_DIM, L1_OUT), lambda i: (0, 0)),  # w1a (resident)
            pl.BlockSpec((HIDDEN_DIM, L1_OUT), lambda i: (0, 0)),  # w1b (resident)
            pl.BlockSpec((1, L1_OUT), lambda i: (0, 0)),           # b1  (resident)
            pl.BlockSpec((L1_OUT, N_CLASSES), lambda i: (0, 0)),   # w2  (resident)
            pl.BlockSpec((1, N_CLASSES), lambda i: (0, 0)),        # b2  (resident)
        ],
        out_specs=pl.BlockSpec((TB, N_CLASSES), lambda i: (i, 0)), # logits
        compiler_params=pltpu.CompilerParams(
            dimension_semantics=("parallel",),
            vmem_limit_bytes=48 * 1024 * 1024,
        ),
        cost_estimate=pl.CostEstimate(flops=flops, transcendentals=0,
                                      bytes_accessed=bytes_accessed),
    )(bug_bf, fix_bf, head["w1a"], head["w1b"], head["b1"],
      head["w2"], head["b2"])

    if B16 != B:
        logits = logits[:B]
    return logits


# ---------------------------------------------------------------------------
# Deterministic surrogate for code_bert(...).last_hidden_state[:, 0, :]
# TODO(synk): RobertaModel ('microsoft/codebert-base') transformer stack has no
#             in-scope Pallas translation; replaced by embedding-lookup +
#             masked mean pooling + tanh as a deterministic stand-in.
# ---------------------------------------------------------------------------
def surrogate_encoder(token_ids, attention_mask, emb_table):
    emb = jnp.take(emb_table, token_ids, axis=0)              # [B, S, H]
    mask = attention_mask.astype(jnp.float32)[..., None]      # [B, S, 1]
    summed = jnp.sum(emb * mask, axis=1)                      # [B, H]
    denom = jnp.maximum(jnp.sum(mask, axis=1), 1.0)           # [B, 1]
    return jnp.tanh(summed / denom)                           # [B, H] "CLS" vec


# ---------------------------------------------------------------------------
# Full forward (mirrors PatchClassifier.forward)
# ---------------------------------------------------------------------------
def patch_classifier_forward(params, head, buggy, fixed,
                             buggy_attention_mask, fixed_attention_mask):
    bug_out = surrogate_encoder(buggy, buggy_attention_mask, params["emb"])
    fix_out = surrogate_encoder(fixed, fixed_attention_mask, params["emb"])
    # final_vec is just the concatenation of the two CLS vectors; produced
    # outside the kernel (plain XLA op) so the kernel never re-writes ~half
    # of its HBM traffic.  Bit-exact f32, same as torch.cat.
    final_vec = jnp.concatenate([bug_out, fix_out], axis=1)
    logits = patch_classifier_head(bug_out, fix_out, head)
    return logits, final_vec


def init_params(key, vocab_size=64):
    k_emb, k_w1, k_b1, k_w2, k_b2 = jax.random.split(key, 5)
    return {
        "emb": jax.random.normal(k_emb, (vocab_size, HIDDEN_DIM),
                                 jnp.float32) * 0.02,
        # PyTorch stores Linear weight as [out, in]; we keep [in, out].
        "w1": jax.random.normal(k_w1, (2 * HIDDEN_DIM, L1_OUT),
                                jnp.float32) * 0.02,
        "b1": jax.random.normal(k_b1, (1, L1_OUT), jnp.float32) * 0.02,
        "w2": jax.random.normal(k_w2, (L1_OUT, N_CLASSES),
                                jnp.float32) * 0.02,
        "b2": jax.random.normal(k_b2, (1, N_CLASSES), jnp.float32) * 0.02,
    }


if __name__ == "__main__":
    key = jax.random.PRNGKey(0)
    k_params, k_bug, k_fix = jax.random.split(key, 3)

    B, S, VOCAB = 2, 8, 64
    params = init_params(k_params, vocab_size=VOCAB)
    head = prepare_head_params(params["w1"], params["b1"],
                               params["w2"], params["b2"])

    buggy = jax.random.randint(k_bug, (B, S), 0, VOCAB, dtype=jnp.int32)
    fixed = jax.random.randint(k_fix, (B, S), 0, VOCAB, dtype=jnp.int32)
    buggy_attention_mask = jnp.ones((B, S), jnp.int32)
    fixed_attention_mask = jnp.ones((B, S), jnp.int32)

    forward = jax.jit(patch_classifier_forward)
    logits, final_vec = forward(params, head, buggy, fixed,
                                buggy_attention_mask, fixed_attention_mask)
    jax.block_until_ready((logits, final_vec))

    # Reference check of the Pallas head against plain JAX (same bf16 cast /
    # f32 accumulation for the first matmul, so tolerances stay tight).
    bug_out = surrogate_encoder(buggy, buggy_attention_mask, params["emb"])
    fix_out = surrogate_encoder(fixed, fixed_attention_mask, params["emb"])
    final_expected = jnp.concatenate([bug_out, fix_out], axis=1)
    h_ref = (jnp.dot(bug_out.astype(jnp.bfloat16), head["w1a"],
                     preferred_element_type=jnp.float32)
             + jnp.dot(fix_out.astype(jnp.bfloat16), head["w1b"],
                       preferred_element_type=jnp.float32)
             + params["b1"])
    h_ref = jnp.maximum(h_ref, 0.0)
    logits_expected = h_ref @ params["w2"] + params["b2"]

    assert logits.shape == (B, N_CLASSES)
    assert final_vec.shape == (B, 2 * HIDDEN_DIM)
    assert jnp.allclose(final_vec, final_expected, atol=1e-6)
    assert jnp.allclose(logits, logits_expected, atol=5e-3, rtol=5e-3)

    print("KERNEL_OK")
</pallas_src>

<mosaic_0001>
module attributes {stable_mosaic.version = 11 : i64} {
  func.func @_head_kernel(%arg0: i32, %arg1: memref<16x768xbf16, #tpu.memory_space<vmem>>, %arg2: memref<16x768xbf16, #tpu.memory_space<vmem>>, %arg3: memref<768x256xbf16, #tpu.memory_space<vmem>>, %arg4: memref<768x256xbf16, #tpu.memory_space<vmem>>, %arg5: memref<1x256xf32, #tpu.memory_space<vmem>>, %arg6: memref<256x2xf32, #tpu.memory_space<vmem>>, %arg7: memref<1x2xf32, #tpu.memory_space<vmem>>, %arg8: memref<16x2xf32, #tpu.memory_space<vmem>>) attributes {dimension_semantics = [#tpu.dimension_semantics<parallel>], iteration_bounds = array<i64: 1>, scalar_prefetch = 0 : i64, scratch_operands = 0 : i64, tpu.core_type = #tpu.core_type<tc>, window_params = [{transform_indices = @transform_0, window_bounds = array<i64: 16, 768>}, {transform_indices = @transform_1, window_bounds = array<i64: 16, 768>}, {pipeline_mode = #tpu.pipeline_mode<synchronous>, transform_indices = @transform_2, window_bounds = array<i64: 768, 256>}, {pipeline_mode = #tpu.pipeline_mode<synchronous>, transform_indices = @transform_3, window_bounds = array<i64: 768, 256>}, {pipeline_mode = #tpu.pipeline_mode<synchronous>, transform_indices = @transform_4, window_bounds = array<i64: 1, 256>}, {pipeline_mode = #tpu.pipeline_mode<synchronous>, transform_indices = @transform_5, window_bounds = array<i64: 256, 2>}, {pipeline_mode = #tpu.pipeline_mode<synchronous>, transform_indices = @transform_6, window_bounds = array<i64: 1, 2>}, {transform_indices = @transform_7, window_bounds = array<i64: 16, 2>}]} {
    %c0 = arith.constant 0 : index
    %c0_0 = arith.constant 0 : index
    %0 = vector.load %arg1[%c0, %c0_0] : memref<16x768xbf16, #tpu.memory_space<vmem>>, vector<16x768xbf16>
    %c0_1 = arith.constant 0 : index
    %c0_2 = arith.constant 0 : index
    %1 = vector.load %arg3[%c0_1, %c0_2] : memref<768x256xbf16, #tpu.memory_space<vmem>>, vector<768x256xbf16>
    %cst = arith.constant dense<0.000000e+00> : vector<16x256xf32>
    %2 = tpu.matmul %0, %1, %cst {dimension_numbers = #tpu.dot_dimension_numbers<[1], [0], [0], [1], [0, 0, 1, 1], [], []>} : vector<16x768xbf16>, vector<768x256xbf16>, vector<16x256xf32> -> vector<16x256xf32>
    %c0_3 = arith.constant 0 : index
    %c0_4 = arith.constant 0 : index
    %3 = vector.load %arg2[%c0_3, %c0_4] : memref<16x768xbf16, #tpu.memory_space<vmem>>, vector<16x768xbf16>
    %c0_5 = arith.constant 0 : index
    %c0_6 = arith.constant 0 : index
    %4 = vector.load %arg4[%c0_5, %c0_6] : memref<768x256xbf16, #tpu.memory_space<vmem>>, vector<768x256xbf16>
    %cst_7 = arith.constant dense<0.000000e+00> : vector<16x256xf32>
    %5 = tpu.matmul %3, %4, %cst_7 {dimension_numbers = #tpu.dot_dimension_numbers<[1], [0], [0], [1], [0, 0, 1, 1], [], []>} : vector<16x768xbf16>, vector<768x256xbf16>, vector<16x256xf32> -> vector<16x256xf32>
    %6 = arith.addf %2, %5 : vector<16x256xf32>
    %c0_8 = arith.constant 0 : index
    %c0_9 = arith.constant 0 : index
    %7 = vector.load %arg5[%c0_8, %c0_9] : memref<1x256xf32, #tpu.memory_space<vmem>>, vector<1x256xf32>
    %8 = vector.broadcast %7 : vector<1x256xf32> to vector<16x256xf32>
    %9 = arith.addf %6, %8 : vector<16x256xf32>
    %cst_10 = arith.constant 0.000000e+00 : f32
    %10 = vector.broadcast %cst_10 : f32 to vector<16x256xf32>
    %11 = arith.maximumf %9, %10 : vector<16x256xf32>
    %c0_11 = arith.constant 0 : index
    %c0_12 = arith.constant 0 : index
    %12 = vector.load %arg6[%c0_11, %c0_12] : memref<256x2xf32, #tpu.memory_space<vmem>>, vector<256x2xf32>
    %cst_13 = arith.constant dense<0.000000e+00> : vector<16x2xf32>
    %13 = tpu.matmul %11, %12, %cst_13 {dimension_numbers = #tpu.dot_dimension_numbers<[1], [0], [0], [1], [0, 0, 1, 1], [], []>} : vector<16x256xf32>, vector<256x2xf32>, vector<16x2xf32> -> vector<16x2xf32>
    %c0_14 = arith.constant 0 : index
    %c0_15 = arith.constant 0 : index
    %14 = vector.load %arg7[%c0_14, %c0_15] : memref<1x2xf32, #tpu.memory_space<vmem>>, vector<1x2xf32>
    %15 = vector.broadcast %14 : vector<1x2xf32> to vector<16x2xf32>
    %16 = arith.addf %13, %15 : vector<16x2xf32>
    %c0_16 = arith.constant 0 : index
    %c0_17 = arith.constant 0 : index
    %17 = vector.load %arg8[%c0_16, %c0_17] : memref<16x2xf32, #tpu.memory_space<vmem>>, vector<16x2xf32>
    tpu.vector_store %arg8[%c0_16, %c0_17], %16 {strides = array<i32>} : memref<16x2xf32, #tpu.memory_space<vmem>>, vector<16x2xf32>,
    return
  }
  func.func @transform_0(%arg0: i32) -> (i32, i32) {
    %c0_i32 = arith.constant 0 : i32
    %c0_i32_0 = arith.constant 0 : i32
    return %arg0, %c0_i32 : i32, i32
  }
  func.func @transform_1(%arg0: i32) -> (i32, i32) {
    %c0_i32 = arith.constant 0 : i32
    %c0_i32_0 = arith.constant 0 : i32
    return %arg0, %c0_i32 : i32, i32
  }
  func.func @transform_2(%arg0: i32) -> (i32, i32) {
    %c0_i32 = arith.constant 0 : i32
    %c0_i32_0 = arith.constant 0 : i32
    %c0_i32_1 = arith.constant 0 : i32
    return %c0_i32, %c0_i32_0 : i32, i32
  }
  func.func @transform_3(%arg0: i32) -> (i32, i32) {
    %c0_i32 = arith.constant 0 : i32
    %c0_i32_0 = arith.constant 0 : i32
    %c0_i32_1 = arith.constant 0 : i32
    return %c0_i32, %c0_i32_0 : i32, i32
  }
  func.func @transform_4(%arg0: i32) -> (i32, i32) {
    %c0_i32 = arith.constant 0 : i32
    %c0_i32_0 = arith.constant 0 : i32
    %c0_i32_1 = arith.constant 0 : i32
    return %c0_i32, %c0_i32_0 : i32, i32
  }
  func.func @transform_5(%arg0: i32) -> (i32, i32) {
    %c0_i32 = arith.constant 0 : i32
    %c0_i32_0 = arith.constant 0 : i32
    %c0_i32_1 = arith.constant 0 : i32
    return %c0_i32, %c0_i32_0 : i32, i32
  }
  func.func @transform_6(%arg0: i32) -> (i32, i32) {
    %c0_i32 = arith.constant 0 : i32
    %c0_i32_0 = arith.constant 0 : i32
    %c0_i32_1 = arith.constant 0 : i32
    return %c0_i32, %c0_i32_0 : i32, i32
  }
  func.func @transform_7(%arg0: i32) -> (i32, i32) {
    %c0_i32 = arith.constant 0 : i32
    %c0_i32_0 = arith.constant 0 : i32
    return %arg0, %c0_i32 : i32, i32
  }
}

</mosaic_0001>

<bundles_post_ra>
// kernel: patch_classifier_forward.1
= control target key start
LH: loop header
LB: loop body
LE: loop exit
PB: predicated region body
PF: predicated region fallthrough
CT: control target
= control target key end

     0   :  { %vm1682_vm0 = vcmask 15360   ;;  %s4229_s3 = inlined_call_operand.vmem [shape: bf16[768,256], index: 3, kind: input, shape index: {}]   ;;  %s4230_s1 = inlined_call_operand.vmem [shape: bf16[16,768], index: 1, kind: input, shape index: {}]   ;;  %s4231_s2 = inlined_call_operand.vmem [shape: bf16[768,256], index: 2, kind: input, shape index: {}]   ;;  %s4232_s0 = inlined_call_operand.vmem [shape: bf16[16,768], index: 0, kind: input, shape index: {}]   ;;  %s4233_s6 = inlined_call_operand.vmem [shape: f32[1,2], index: 6, kind: input, shape index: {}]   ;;  %s4234_s5 = inlined_call_operand.vmem [shape: f32[256,2], index: 5, kind: input, shape index: {}]   ;;  %s4235_s4 = inlined_call_operand.vmem [shape: f32[1,256], index: 4, kind: input, shape index: {}]   ;;  %s4236_s7 = inlined_call_operand.vmem [shape: f32[16,2], index: 7, kind: output, shape index: {}]  }
   0x1   :  { %v1771_v0 = vld [vmem:[%s4229_s3 + $0x70] sm:$0xf]  ;;  %v2628_v1 = vld [vmem:[%s4229_s3 + $0x74] sm:$0xf0]  ;;  %v1763_v11 = vld [vmem:[%s4229_s3 + $0x60] sm:$0xf] }
   0x2   :  { %v1835_v2 = vld [vmem:[%s4229_s3 + $0xf0] sm:$0xf]  ;;  %v1772_v3 = vor.u32 %v2628_v1, %v1771_v0  ;;  %v2644_v4 = vld [vmem:[%s4229_s3 + $0xf4] sm:$0xf0]  ;;  %v2626_v13 = vld [vmem:[%s4229_s3 + $0x64] sm:$0xf0] }
   0x3   :  { %v1899_v5 = vld [vmem:[%s4229_s3 + $0x170] sm:$0xf]  ;;  %v2660_v6 = vld [vmem:[%s4229_s3 + $0x174] sm:$0xf0]  ;;  %v1836_v7 = vor.u32 %v2644_v4, %v1835_v2  ;;  %v1827_v14 = vld [vmem:[%s4229_s3 + $0xe0] sm:$0xf]  ;;  %v1764_v16 = vor.u32 %v2626_v13, %v1763_v11 }
   0x4   :  { %v1900_v8 = vor.u32 %v2660_v6, %v1899_v5  ;;  %v1963_v9 = vld [vmem:[%s4229_s3 + $0x1f0] sm:$0xf]  ;;  %v2676_v10 = vld [vmem:[%s4229_s3 + $0x1f4] sm:$0xf0]  ;;  %740 = vmatpush.bf16.msra.mxu0 %v1772_v3  ;;  %v2642_v15 = vld [vmem:[%s4229_s3 + $0xe4] sm:$0xf0] }
   0x5   :  { %v1964_v12 = vor.u32 %v2676_v10, %v1963_v9  ;;  %754 = vmatpush.bf16.msra.mxu1 %v1836_v7  ;;  %v1828_v17 = vor.u32 %v2642_v15, %v1827_v14  ;;  %v1891_v18 = vld [vmem:[%s4229_s3 + $0x160] sm:$0xf]  ;;  %v2658_v19 = vld [vmem:[%s4229_s3 + $0x164] sm:$0xf0]  ;;  %v1755_v23 = vld [vmem:[%s4229_s3 + $0x50] sm:$0xf] }
   0x6   :  { %768 = vmatpush.bf16.msra.mxu2 %v1900_v8  ;;  %v1955_v20 = vld [vmem:[%s4229_s3 + $0x1e0] sm:$0xf]  ;;  %v1892_v21 = vor.u32 %v2658_v19, %v1891_v18  ;;  %v2674_v22 = vld [vmem:[%s4229_s3 + $0x1e4] sm:$0xf0]  ;;  %v2624_v24 = vld [vmem:[%s4229_s3 + $0x54] sm:$0xf0] }
   0x7   :  { %782 = vmatpush.bf16.msra.mxu3 %v1964_v12  ;;  %v1956_v25 = vor.u32 %v2674_v22, %v1955_v20  ;;  %v1819_v26 = vld [vmem:[%s4229_s3 + $0xd0] sm:$0xf]  ;;  %v2640_v27 = vld [vmem:[%s4229_s3 + $0xd4] sm:$0xf0]  ;;  %v1756_v29 = vor.u32 %v2624_v24, %v1755_v23  ;;  %v1747_v35 = vld [vmem:[%s4229_s3 + $0x40] sm:$0xf] }
   0x8   :  { %v1883_v28 = vld [vmem:[%s4229_s3 + $0x150] sm:$0xf]  ;;  %741 = vmatpush.bf16.msra.mxu0 %v1764_v16  ;;  %v2656_v30 = vld [vmem:[%s4229_s3 + $0x154] sm:$0xf0]  ;;  %v1820_v33 = vor.u32 %v2640_v27, %v1819_v26  ;;  %v2622_v36 = vld [vmem:[%s4229_s3 + $0x44] sm:$0xf0] }
   0x9   :  { %v1947_v31 = vld [vmem:[%s4229_s3 + $0x1d0] sm:$0xf]  ;;  %v2672_v32 = vld [vmem:[%s4229_s3 + $0x1d4] sm:$0xf0]  ;;  %755 = vmatpush.bf16.msra.mxu1 %v1828_v17  ;;  %v1884_v34 = vor.u32 %v2656_v30, %v1883_v28  ;;  %v1811_v37 = vld [vmem:[%s4229_s3 + $0xc0] sm:$0xf]  ;;  %v1748_v44 = vor.u32 %v2622_v36, %v1747_v35 }
   0xa   :  { %769 = vmatpush.bf16.msra.mxu2 %v1892_v21  ;;  %v1948_v38 = vor.u32 %v2672_v32, %v1947_v31  ;;  %v2638_v39 = vld [vmem:[%s4229_s3 + $0xc4] sm:$0xf0]  ;;  %v1875_v40 = vld [vmem:[%s4229_s3 + $0x140] sm:$0xf]  ;;  %v1739_v47 = vld [vmem:[%s4229_s3 + $0x30] sm:$0xf] }
   0xb   :  { %783 = vmatpush.bf16.msra.mxu3 %v1956_v25  ;;  %v2654_v41 = vld [vmem:[%s4229_s3 + $0x144] sm:$0xf0]  ;;  %v1939_v42 = vld [vmem:[%s4229_s3 + $0x1c0] sm:$0xf]  ;;  %v1812_v45 = vor.u32 %v2638_v39, %v1811_v37  ;;  %v2620_v48 = vld [vmem:[%s4229_s3 + $0x34] sm:$0xf0] }
   0xc   :  { %v2670_v43 = vld [vmem:[%s4229_s3 + $0x1c4] sm:$0xf0]  ;;  %742 = vmatpush.bf16.msra.mxu0 %v1756_v29  ;;  %v1876_v46 = vor.u32 %v2654_v41, %v1875_v40  ;;  %v1803_v49 = vld [vmem:[%s4229_s3 + $0xb0] sm:$0xf]  ;;  %v2636_v51 = vld [vmem:[%s4229_s3 + $0xb4] sm:$0xf0]  ;;  %v1740_v56 = vor.u32 %v2620_v48, %v1739_v47 }
   0xd   :  { %756 = vmatpush.bf16.msra.mxu1 %v1820_v33  ;;  %v1940_v50 = vor.u32 %v2670_v43, %v1939_v42  ;;  %v1867_v52 = vld [vmem:[%s4229_s3 + $0x130] sm:$0xf]  ;;  %v2652_v53 = vld [vmem:[%s4229_s3 + $0x134] sm:$0xf0]  ;;  %v1804_v57 = vor.u32 %v2636_v51, %v1803_v49  ;;  %v1731_v59 = vld [vmem:[%s4229_s3 + $0x20] sm:$0xf] }
   0xe   :  { %770 = vmatpush.bf16.msra.mxu2 %v1884_v34  ;;  %v1931_v54 = vld [vmem:[%s4229_s3 + $0x1b0] sm:$0xf]  ;;  %v2668_v55 = vld [vmem:[%s4229_s3 + $0x1b4] sm:$0xf0]  ;;  %v1868_v58 = vor.u32 %v2652_v53, %v1867_v52  ;;  %v2618_v60 = vld [vmem:[%s4229_s3 + $0x24] sm:$0xf0] }
   0xf   :  { %784 = vmatpush.bf16.msra.mxu3 %v1948_v38  ;;  %v1795_v61 = vld [vmem:[%s4229_s3 + $0xa0] sm:$0xf]  ;;  %v1932_v62 = vor.u32 %v2668_v55, %v1931_v54  ;;  %v2634_v63 = vld [vmem:[%s4229_s3 + $0xa4] sm:$0xf0]  ;;  %v1732_v4 = vor.u32 %v2618_v60, %v1731_v59  ;;  %v1723_v7 = vld [vmem:[%s4229_s3 + $0x10] sm:$0xf] }
  0x10   :  { %743 = vmatpush.bf16.msra.mxu0 %v1748_v44  ;;  %v1859_v0 = vld [vmem:[%s4229_s3 + $0x120] sm:$0xf]  ;;  %v2650_v1 = vld [vmem:[%s4229_s3 + $0x124] sm:$0xf0]  ;;  %v1796_v5 = vor.u32 %v2634_v63, %v1795_v61  ;;  %v2616_v8 = vld [vmem:[%s4229_s3 + $0x14] sm:$0xf0] }
  0x11   :  { %757 = vmatpush.bf16.msra.mxu1 %v1812_v45  ;;  %v1923_v2 = vld [vmem:[%s4229_s3 + $0x1a0] sm:$0xf]  ;;  %v2666_v3 = vld [vmem:[%s4229_s3 + $0x1a4] sm:$0xf0]  ;;  %v1860_v6 = vor.u32 %v2650_v1, %v1859_v0  ;;  %v1787_v9 = vld [vmem:[%s4229_s3 + $0x90] sm:$0xf]  ;;  %v1724_v16 = vor.u32 %v2616_v8, %v1723_v7 }
  0x12   :  { %771 = vmatpush.bf16.msra.mxu2 %v1876_v46  ;;  %v1924_v10 = vor.u32 %v2666_v3, %v1923_v2  ;;  %v2632_v11 = vld [vmem:[%s4229_s3 + $0x94] sm:$0xf0]  ;;  %v1851_v12 = vld [vmem:[%s4229_s3 + $0x110] sm:$0xf]  ;;  %v1715_v17 = vld [vmem:[%s4229_s3] sm:$0xf] }
  0x13   :  { %785 = vmatpush.bf16.msra.mxu3 %v1940_v50  ;;  %v2648_v13 = vld [vmem:[%s4229_s3 + $0x114] sm:$0xf0]  ;;  %v1915_v14 = vld [vmem:[%s4229_s3 + $0x190] sm:$0xf]  ;;  %v2614_v18 = vld [vmem:[%s4229_s3 + $0x4] sm:$0xf0]  ;;  %v1788_v19 = vor.u32 %v2632_v11, %v1787_v9 }
  0x14   :  { %744 = vmatpush.bf16.msra.mxu0 %v1740_v56  ;;  %v2664_v15 = vld [vmem:[%s4229_s3 + $0x194] sm:$0xf0]  ;;  %v1852_v20 = vor.u32 %v2648_v13, %v1851_v12  ;;  %v1779_v21 = vld [vmem:[%s4229_s3 + $0x80] sm:$0xf]  ;;  %v2630_v22 = vld [vmem:[%s4229_s3 + $0x84] sm:$0xf0]  ;;  %v1716_v31 = vor.u32 %v2614_v18, %v1715_v17 }
  0x15   :  { %758 = vmatpush.bf16.msra.mxu1 %v1804_v57  ;;  %v1843_v23 = vld [vmem:[%s4229_s3 + $0x100] sm:$0xf]  ;;  %v1916_v24 = vor.u32 %v2664_v15, %v1915_v14  ;;  %v2646_v25 = vld [vmem:[%s4229_s3 + $0x104] sm:$0xf0]  ;;  %v2027_v28 = vld [vmem:[%s4229_s3 + $0x270] sm:$0xf]  ;;  %v1780_v35 = vor.u32 %v2630_v22, %v1779_v21 }
  0x16   :  { %772 = vmatpush.bf16.msra.mxu2 %v1868_v58  ;;  %v1907_v26 = vld [vmem:[%s4229_s3 + $0x180] sm:$0xf]  ;;  %v2662_v27 = vld [vmem:[%s4229_s3 + $0x184] sm:$0xf0]  ;;  %v2692_v29 = vld [vmem:[%s4229_s3 + $0x274] sm:$0xf0]  ;;  %v1844_v36 = vor.u32 %v2646_v25, %v1843_v23 }
  0x17   :  { %786 = vmatpush.bf16.msra.mxu3 %v1932_v62  ;;  %v2091_v30 = vld [vmem:[%s4229_s3 + $0x2f0] sm:$0xf]  ;;  %v2708_v32 = vld [vmem:[%s4229_s3 + $0x2f4] sm:$0xf0]  ;;  %v2627_v33 = vld [vmem:[%s4229_s3 + $0x74] sm:$0xf]  ;;  %v1908_v39 = vor.u32 %v2662_v27, %v1907_v26  ;;  %v2028_v40 = vor.u32 %v2692_v29, %v2027_v28 }
  0x18   :  { %745 = vmatpush.bf16.msra.mxu0 %v1732_v4  ;;  %v1773_v34 = vld [vmem:[%s4229_s3 + $0x78] sm:$0xf0]  ;;  %v2643_v37 = vld [vmem:[%s4229_s3 + $0xf4] sm:$0xf]  ;;  %v2019_v41 = vld [vmem:[%s4229_s3 + $0x260] sm:$0xf]  ;;  %v2092_v42 = vor.u32 %v2708_v32, %v2091_v30 }
  0x19   :  { %759 = vmatpush.bf16.msra.mxu1 %v1796_v5  ;;  %v1837_v38 = vld [vmem:[%s4229_s3 + $0xf8] sm:$0xf0]  ;;  %v1776_v43 = vor.u32 %v2627_v33, %v1773_v34  ;;  %v2690_v44 = vld [vmem:[%s4229_s3 + $0x264] sm:$0xf0]  ;;  %v2083_v45 = vld [vmem:[%s4229_s3 + $0x2e0] sm:$0xf] }
  0x1a   :  { %773 = vmatpush.bf16.msra.mxu2 %v1860_v6  ;;  %v2706_v46 = vld [vmem:[%s4229_s3 + $0x2e4] sm:$0xf0]  ;;  %v1840_v47 = vor.u32 %v2643_v37, %v1837_v38  ;;  %v2625_v48 = vld [vmem:[%s4229_s3 + $0x64] sm:$0xf]  ;;  %v1765_v49 = vld [vmem:[%s4229_s3 + $0x68] sm:$0xf0]  ;;  %v2020_v54 = vor.u32 %v2690_v44, %v2019_v41 }
  0x1b   :  { %787 = vmatpush.bf16.msra.mxu3 %v1924_v10  ;;  %v2641_v50 = vld [vmem:[%s4229_s3 + $0xe4] sm:$0xf]  ;;  %v1829_v51 = vld [vmem:[%s4229_s3 + $0xe8] sm:$0xf0]  ;;  %v1691_v52 = vld [vmem:[%s4230_s1] sm:$0xf]  ;;  %v2084_v59 = vor.u32 %v2706_v46, %v2083_v45  ;;  %v1768_v60 = vor.u32 %v2625_v48, %v1765_v49 }
  0x1c   :  { %746 = vmatpush.bf16.msra.mxu0 %v1724_v16  ;;  %v2610_v53 = vld [vmem:[%s4230_s1 + $0x14] sm:$0xf0]  ;;  %v2011_v55 = vld [vmem:[%s4229_s3 + $0x250] sm:$0xf]  ;;  %v2623_v62 = vld [vmem:[%s4229_s3 + $0x54] sm:$0xf]  ;;  %v1832_v0 = vor.u32 %v2641_v50, %v1829_v51 }
  0x1d   :  { %760 = vmatpush.bf16.msra.mxu1 %v1788_v19  ;;  %v2688_v56 = vld [vmem:[%s4229_s3 + $0x254] sm:$0xf0]  ;;  %v2075_v57 = vld [vmem:[%s4229_s3 + $0x2d0] sm:$0xf]  ;;  %v3037_v58 = vor.u32 %v2610_v53, %v1691_v52  ;;  %v1757_v63 = vld [vmem:[%s4229_s3 + $0x58] sm:$0xf0] }
  0x1e   :  { %774 = vmatpush.bf16.msra.mxu2 %v1852_v20  ;;  %v2704_v61 = vld [vmem:[%s4229_s3 + $0x2d4] sm:$0xf0]  ;;  %v2639_v1 = vld [vmem:[%s4229_s3 + $0xd4] sm:$0xf]  ;;  %v2607_v2 = vld [vmem:[%s4230_s1 + $0x4] sm:$0xf]  ;;  %v2012_v8 = vor.u32 %v2688_v56, %v2011_v55  ;;  %v1760_v13 = vor.u32 %v2623_v62, %v1757_v63 }
  0x1f   :  { %788 = vmatpush.bf16.msra.mxu3 %v1916_v24  ;;  %v1693_v3 = vld [vmem:[%s4230_s1 + $0x18] sm:$0xf0]  ;;  %v1699_v6 = vld [vmem:[%s4230_s1 + $0x8] sm:$0xf]  ;;  %v2611_v7 = vld [vmem:[%s4230_s1 + $0x1c] sm:$0xf0]  ;;  %v2076_v12 = vor.u32 %v2704_v61, %v2075_v57 }
  0x20   :  { %747 = vmatpush.bf16.msra.mxu0 %v1716_v31  ;;  %v1821_v4 = vld [vmem:[%s4229_s3 + $0xd8] sm:$0xf0]  ;;  %v3061_v5 = vor.u32 %v2607_v2, %v1693_v3  ;;  %v2003_v9 = vld [vmem:[%s4229_s3 + $0x240] sm:$0xf]  ;;  %v2686_v10 = vld [vmem:[%s4229_s3 + $0x244] sm:$0xf0]  ;;  %v3075_v11 = vor.u32 %v2611_v7, %v1699_v6 }
  0x21   :  { %761 = vmatpush.bf16.msra.mxu1 %v1780_v35  ;;  %v2067_v14 = vld [vmem:[%s4229_s3 + $0x2c0] sm:$0xf]  ;;  %v2702_v15 = vld [vmem:[%s4229_s3 + $0x2c4] sm:$0xf0]  ;;  %v2621_v16 = vld [vmem:[%s4229_s3 + $0x44] sm:$0xf]  ;;  %v1824_v17 = vor.u32 %v2639_v1, %v1821_v4  ;;  %v2004_v24 = vor.u32 %v2686_v10, %v2003_v9 }
  0x22   :  { %775 = vmatpush.bf16.msra.mxu2 %v1844_v36  ;;  %v1749_v18 = vld [vmem:[%s4229_s3 + $0x48] sm:$0xf0]  ;;  %v1701_v20 = vld [vmem:[%s4230_s1 + $0x20] sm:$0xf0]  ;;  %v2068_v25 = vor.u32 %v2702_v15, %v2067_v14  ;;  %v1995_v27 = vld [vmem:[%s4229_s3 + $0x230] sm:$0xf] }
  0x23   :  { %789 = vmatpush.bf16.msra.mxu3 %v1908_v39  ;;  %748 = vmatmul.bf16.vlgmr.msra.gmra.mxu0 %v3037_v58  ;;  %v2608_v19 = vld [vmem:[%s4230_s1 + $0xc] sm:$0xf]  ;;  %v2637_v21 = vld [vmem:[%s4229_s3 + $0xc4] sm:$0xf]  ;;  %v1752_v26 = vor.u32 %v2621_v16, %v1749_v18  ;;  %v2684_v28 = vld [vmem:[%s4229_s3 + $0x234] sm:$0xf0] }
  0x24   :  { %796 = vmatpush.bf16.msrb.mxu0 %v2028_v40  ;;  %762 = vmatmul.bf16.vlgmr.msra.gmra.mxu1 %v3061_v5  ;;  %v1813_v22 = vld [vmem:[%s4229_s3 + $0xc8] sm:$0xf0]  ;;  %v3103_v23 = vor.u32 %v2608_v19, %v1701_v20  ;;  %v2059_v29 = vld [vmem:[%s4229_s3 + $0x2b0] sm:$0xf]  ;;  %v2700_v31 = vld [vmem:[%s4229_s3 + $0x2b4] sm:$0xf0]  ;;  %v1996_v36 = vor.u32 %v2684_v28, %v1995_v27 }
  0x25   :  { %810 = vmatpush.bf16.msrb.mxu1 %v2092_v42  ;;  %776 = vmatmul.bf16.vlgmr.msra.gmra.mxu2 %v3075_v11  ;;  %v1816_v30 = vor.u32 %v2637_v21, %v1813_v22  ;;  %v2619_v32 = vld [vmem:[%s4229_s3 + $0x34] sm:$0xf]  ;;  %v1741_v33 = vld [vmem:[%s4229_s3 + $0x38] sm:$0xf0]  ;;  %v2060_v37 = vor.u32 %v2700_v31, %v2059_v29  ;;  %v1987_v39 = vld [vmem:[%s4229_s3 + $0x220] sm:$0xf] }
  0x26   :  { %824 = vmatpush.bf16.msrb.mxu2 %v1776_v43  ;;  %v2635_v34 = vld [vmem:[%s4229_s3 + $0xb4] sm:$0xf]  ;;  %v1805_v35 = vld [vmem:[%s4229_s3 + $0xb8] sm:$0xf0]  ;;  %790 = vmatmul.bf16.vlgmr.msra.gmra.mxu3 %v3103_v23  ;;  %v1744_v38 = vor.u32 %v2619_v32, %v1741_v33  ;;  %v2682_v40 = vld [vmem:[%s4229_s3 + $0x224] sm:$0xf0] }
  0x27   :  { %838 = vmatpush.bf16.msrb.mxu3 %v1840_v47  ;;  %v2051_v41 = vld [vmem:[%s4229_s3 + $0x2a0] sm:$0xf]  ;;  %v1808_v42 = vor.u32 %v2635_v34, %v1805_v35  ;;  %v2698_v43 = vld [vmem:[%s4229_s3 + $0x2a4] sm:$0xf0]  ;;  %v2617_v44 = vld [vmem:[%s4229_s3 + $0x24] sm:$0xf]  ;;  %v1988_v48 = vor.u32 %v2682_v40, %v1987_v39 }
  0x28   :  { %797 = vmatpush.bf16.msrb.mxu0 %v2020_v54  ;;  %v1733_v45 = vld [vmem:[%s4229_s3 + $0x28] sm:$0xf0]  ;;  %v2633_v46 = vld [vmem:[%s4229_s3 + $0xa4] sm:$0xf]  ;;  %v2052_v49 = vor.u32 %v2698_v43, %v2051_v41  ;;  %v1979_v51 = vld [vmem:[%s4229_s3 + $0x210] sm:$0xf] }
  0x29   :  { %811 = vmatpush.bf16.msrb.mxu1 %v2084_v59  ;;  %v1797_v47 = vld [vmem:[%s4229_s3 + $0xa8] sm:$0xf0]  ;;  %v1736_v50 = vor.u32 %v2617_v44, %v1733_v45  ;;  %v2680_v52 = vld [vmem:[%s4229_s3 + $0x214] sm:$0xf0]  ;;  %v2043_v53 = vld [vmem:[%s4229_s3 + $0x290] sm:$0xf] }
  0x2a   :  { %825 = vmatpush.bf16.msrb.mxu2 %v1768_v60  ;;  %v1800_v54 = vor.u32 %v2633_v46, %v1797_v47  ;;  %v2696_v55 = vld [vmem:[%s4229_s3 + $0x294] sm:$0xf0]  ;;  %v2615_v56 = vld [vmem:[%s4229_s3 + $0x14] sm:$0xf]  ;;  %v1725_v57 = vld [vmem:[%s4229_s3 + $0x18] sm:$0xf0]  ;;  %v1980_v61 = vor.u32 %v2680_v52, %v1979_v51 }
  0x2b   :  { %839 = vmatpush.bf16.msrb.mxu3 %v1832_v0  ;;  %v2631_v59 = vld [vmem:[%s4229_s3 + $0x94] sm:$0xf]  ;;  %v1789_v60 = vld [vmem:[%s4229_s3 + $0x98] sm:$0xf0]  ;;  %v1971_v62 = vld [vmem:[%s4229_s3 + $0x200] sm:$0xf]  ;;  %v2044_v1 = vor.u32 %v2696_v55, %v2043_v53  ;;  %v1728_v2 = vor.u32 %v2615_v56, %v1725_v57 }
  0x2c   :  { %798 = vmatpush.bf16.msrb.mxu0 %v2012_v8  ;;  %v2678_v63 = vld [vmem:[%s4229_s3 + $0x204] sm:$0xf0]  ;;  %v2035_v0 = vld [vmem:[%s4229_s3 + $0x280] sm:$0xf]  ;;  %v2613_v4 = vld [vmem:[%s4229_s3 + $0x4] sm:$0xf]  ;;  %v1792_v7 = vor.u32 %v2631_v59, %v1789_v60 }
  0x2d   :  { %812 = vmatpush.bf16.msrb.mxu1 %v2076_v12  ;;  %v2694_v3 = vld [vmem:[%s4229_s3 + $0x284] sm:$0xf0]  ;;  %v1717_v6 = vld [vmem:[%s4229_s3 + $0x8] sm:$0xf0]  ;;  %v2629_v8 = vld [vmem:[%s4229_s3 + $0x84] sm:$0xf]  ;;  %v1972_v15 = vor.u32 %v2678_v63, %v1971_v62 }
  0x2e   :  { %826 = vmatpush.bf16.msrb.mxu2 %v1760_v13  ;;  %v1781_v9 = vld [vmem:[%s4229_s3 + $0x88] sm:$0xf0]  ;;  %v2659_v10 = vld [vmem:[%s4229_s3 + $0x174] sm:$0xf]  ;;  %v1901_v12 = vld [vmem:[%s4229_s3 + $0x178] sm:$0xf0]  ;;  %v2036_v19 = vor.u32 %v2694_v3, %v2035_v0  ;;  %v1720_v20 = vor.u32 %v2613_v4, %v1717_v6 }
  0x2f   :  { %840 = vmatpush.bf16.msrb.mxu3 %v1824_v17  ;;  %v2675_v13 = vld [vmem:[%s4229_s3 + $0x1f4] sm:$0xf]  ;;  %v1965_v14 = vld [vmem:[%s4229_s3 + $0x1f8] sm:$0xf0]  ;;  %v1707_v22 = vld [vmem:[%s4230_s1 + $0x10] sm:$0xf] }
  0x30   :  { %799 = vmatpush.bf16.msrb.mxu0 %v2004_v24  ;;  %v2691_v16 = vld [vmem:[%s4229_s3 + $0x274] sm:$0xf]  ;;  %v2029_v17 = vld [vmem:[%s4229_s3 + $0x278] sm:$0xf0]  ;;  %v2612_v24 = vld [vmem:[%s4230_s1 + $0x24] sm:$0xf0]  ;;  %v1968_v29 = vor.u32 %v2675_v13, %v1965_v14 }
  0x31   :  { %813 = vmatpush.bf16.msrb.mxu1 %v2068_v25  ;;  %v2707_v18 = vld [vmem:[%s4229_s3 + $0x2f4] sm:$0xf]  ;;  %v2093_v21 = vld [vmem:[%s4229_s3 + $0x2f8] sm:$0xf0]  ;;  %v1784_v25 = vor.u32 %v2629_v8, %v1781_v9  ;;  %v1709_v28 = vld [vmem:[%s4230_s1 + $0x28] sm:$0xf0]  ;;  %v3247_v35 = vor.u32 %v2612_v24, %v1707_v22 }
  0x32   :  { %827 = vmatpush.bf16.msrb.mxu2 %v1752_v26  ;;  %v1904_v26 = vor.u32 %v2659_v10, %v1901_v12  ;;  %v2609_v27 = vld [vmem:[%s4230_s1 + $0x14] sm:$0xf]  ;;  %v2657_v31 = vld [vmem:[%s4229_s3 + $0x164] sm:$0xf]  ;;  %v1893_v32 = vld [vmem:[%s4229_s3 + $0x168] sm:$0xf0]  ;;  %v2096_v34 = vor.u32 %v2707_v18, %v2093_v21 }
  0x33   :  { %841 = vmatpush.bf16.msrb.mxu3 %v1816_v30  ;;  %v2032_v30 = vor.u32 %v2691_v16, %v2029_v17  ;;  %v2673_v33 = vld [vmem:[%s4229_s3 + $0x1e4] sm:$0xf]  ;;  %v3258_v39 = vor.u32 %v2609_v27, %v1709_v28  ;;  %v2085_v41 = vld [vmem:[%s4229_s3 + $0x2e8] sm:$0xf0]  ;;  %v2655_v45 = vld [vmem:[%s4229_s3 + $0x154] sm:$0xf] }
  0x34   :  { %800 = vmatpush.bf16.msrb.mxu0 %v1996_v36  ;;  %v1957_v36 = vld [vmem:[%s4229_s3 + $0x1e8] sm:$0xf0]  ;;  %v2705_v40 = vld [vmem:[%s4229_s3 + $0x2e4] sm:$0xf]  ;;  %v1885_v46 = vld [vmem:[%s4229_s3 + $0x158] sm:$0xf0] }
  0x35   :  { %814 = vmatpush.bf16.msrb.mxu1 %v2060_v37  ;;  %v2689_v37 = vld [vmem:[%s4229_s3 + $0x264] sm:$0xf]  ;;  %v1960_v43 = vor.u32 %v2673_v33, %v1957_v36  ;;  %v2671_v47 = vld [vmem:[%s4229_s3 + $0x1d4] sm:$0xf]  ;;  %v2013_v51 = vld [vmem:[%s4229_s3 + $0x258] sm:$0xf0] }
  0x36   :  { %828 = vmatpush.bf16.msrb.mxu2 %v1744_v38  ;;  %v2021_v38 = vld [vmem:[%s4229_s3 + $0x268] sm:$0xf0]  ;;  %v2703_v52 = vld [vmem:[%s4229_s3 + $0x2d4] sm:$0xf]  ;;  %v2077_v53 = vld [vmem:[%s4229_s3 + $0x2d8] sm:$0xf0] }
  0x37   :  { %842 = vmatpush.bf16.msrb.mxu3 %v1808_v42  ;;  %v1896_v42 = vor.u32 %v2657_v31, %v1893_v32  ;;  %v2024_v44 = vor.u32 %v2689_v37, %v2021_v38  ;;  %v2653_v57 = vld [vmem:[%s4229_s3 + $0x144] sm:$0xf]  ;;  %v1877_v59 = vld [vmem:[%s4229_s3 + $0x148] sm:$0xf0]  ;;  %v2080_v60 = vor.u32 %v2703_v52, %v2077_v53  ;;  %v2651_v4 = vld [vmem:[%s4229_s3 + $0x134] sm:$0xf] }
  0x38   :  { %801 = vmatpush.bf16.msrb.mxu0 %v1988_v48  ;;  %v2088_v48 = vor.u32 %v2705_v40, %v2085_v41  ;;  %v2005_v62 = vld [vmem:[%s4229_s3 + $0x248] sm:$0xf0]  ;;  %v2701_v63 = vld [vmem:[%s4229_s3 + $0x2c4] sm:$0xf]  ;;  %v1869_v6 = vld [vmem:[%s4229_s3 + $0x138] sm:$0xf0] }
  0x39   :  { %815 = vmatpush.bf16.msrb.mxu1 %v2052_v49  ;;  %v1949_v49 = vld [vmem:[%s4229_s3 + $0x1d8] sm:$0xf0]  ;;  %v2069_v0 = vld [vmem:[%s4229_s3 + $0x2c8] sm:$0xf0]  ;;  %v2683_v10 = vld [vmem:[%s4229_s3 + $0x234] sm:$0xf] }
  0x3a   :  { %829 = vmatpush.bf16.msrb.mxu2 %v1736_v50  ;;  %v2687_v50 = vld [vmem:[%s4229_s3 + $0x254] sm:$0xf]  ;;  %v1952_v55 = vor.u32 %v2671_v47, %v1949_v49  ;;  %v2072_v8 = vor.u32 %v2701_v63, %v2069_v0  ;;  %v1933_v9 = vld [vmem:[%s4229_s3 + $0x1b8] sm:$0xf0]  ;;  %v2649_v18 = vld [vmem:[%s4229_s3 + $0x124] sm:$0xf] }
  0x3b   :  { %843 = vmatpush.bf16.msrb.mxu3 %v1800_v54  ;;  %v1888_v54 = vor.u32 %v2655_v45, %v1885_v46  ;;  %v2016_v56 = vor.u32 %v2687_v50, %v2013_v51  ;;  %v1997_v12 = vld [vmem:[%s4229_s3 + $0x238] sm:$0xf0]  ;;  %v2699_v13 = vld [vmem:[%s4229_s3 + $0x2b4] sm:$0xf]  ;;  %v1925_v22 = vld [vmem:[%s4229_s3 + $0x1a8] sm:$0xf0] }
  0x3c   :  { %802 = vmatpush.bf16.msrb.mxu0 %v1980_v61  ;;  %v2685_v61 = vld [vmem:[%s4229_s3 + $0x244] sm:$0xf]  ;;  %v2061_v14 = vld [vmem:[%s4229_s3 + $0x2b8] sm:$0xf0]  ;;  %v2000_v17 = vor.u32 %v2683_v10, %v1997_v12  ;;  %v2053_v27 = vld [vmem:[%s4229_s3 + $0x2a8] sm:$0xf0] }
  0x3d   :  { %816 = vmatpush.bf16.msrb.mxu1 %v2044_v1  ;;  %v1880_v1 = vor.u32 %v2653_v57, %v1877_v59  ;;  %v2008_v3 = vor.u32 %v2685_v61, %v2005_v62  ;;  %v2064_v21 = vor.u32 %v2699_v13, %v2061_v14  ;;  %v2681_v24 = vld [vmem:[%s4229_s3 + $0x224] sm:$0xf]  ;;  %v2647_v31 = vld [vmem:[%s4229_s3 + $0x114] sm:$0xf]  ;;  %v1853_v32 = vld [vmem:[%s4229_s3 + $0x118] sm:$0xf0] }
  0x3e   :  { %830 = vmatpush.bf16.msrb.mxu2 %v1728_v2  ;;  %v2663_v33 = vld [vmem:[%s4229_s3 + $0x194] sm:$0xf]  ;;  %v1917_v36 = vld [vmem:[%s4229_s3 + $0x198] sm:$0xf0]  ;;  %v2661_v47 = vld [vmem:[%s4229_s3 + $0x184] sm:$0xf] }
  0x3f   :  { %844 = vmatpush.bf16.msrb.mxu3 %v1792_v7  ;;  %v2667_v7 = vld [vmem:[%s4229_s3 + $0x1b4] sm:$0xf]  ;;  %v1981_v38 = vld [vmem:[%s4229_s3 + $0x218] sm:$0xf0]  ;;  %v1920_v45 = vor.u32 %v2663_v33, %v1917_v36  ;;  %v2677_v49 = vld [vmem:[%s4229_s3 + $0x204] sm:$0xf] }
  0x40   :  { %803 = vmatpush.bf16.msrb.mxu0 %v1972_v15  ;;  %v1872_v15 = vor.u32 %v2651_v4, %v1869_v6  ;;  %v1936_v16 = vor.u32 %v2667_v7, %v1933_v9  ;;  %v2679_v37 = vld [vmem:[%s4229_s3 + $0x214] sm:$0xf]  ;;  %v2045_v41 = vld [vmem:[%s4229_s3 + $0x298] sm:$0xf0]  ;;  %v1973_v51 = vld [vmem:[%s4229_s3 + $0x208] sm:$0xf0] }
  0x41   :  { %817 = vmatpush.bf16.msrb.mxu1 %v2036_v19  ;;  %v1861_v19 = vld [vmem:[%s4229_s3 + $0x128] sm:$0xf0]  ;;  %v2695_v40 = vld [vmem:[%s4229_s3 + $0x294] sm:$0xf]  ;;  %v1984_v46 = vor.u32 %v2679_v37, %v1981_v38  ;;  %v2693_v52 = vld [vmem:[%s4229_s3 + $0x284] sm:$0xf]  ;;  %v1976_v61 = vor.u32 %v2677_v49, %v1973_v51 }
  0x42   :  { %831 = vmatpush.bf16.msrb.mxu2 %v1720_v20  ;;  %v2665_v20 = vld [vmem:[%s4229_s3 + $0x1a4] sm:$0xf]  ;;  %v1864_v28 = vor.u32 %v2649_v18, %v1861_v19  ;;  %v2048_v50 = vor.u32 %v2695_v40, %v2045_v41  ;;  %v2037_v53 = vld [vmem:[%s4229_s3 + $0x288] sm:$0xf0]  ;;  %v2542_v59 = vld [vmem:[%s4231_s2 + $0xf4] sm:$0xf0] }
  0x43   :  { %845 = vmatpush.bf16.msrb.mxu3 %v1784_v25  ;;  %804 = vmatmul.bf16.vlgmr.msrb.gmra.mxu0 %v3247_v35  ;;  %v1989_v25 = vld [vmem:[%s4229_s3 + $0x228] sm:$0xf0]  ;;  %v2371_v62 = vld [vmem:[%s4231_s2 + $0x1f0] sm:$0xf]  ;;  %v2574_v63 = vld [vmem:[%s4231_s2 + $0x1f4] sm:$0xf0]  ;;  %v2040_v0 = vor.u32 %v2693_v52, %v2037_v53 }
  0x44   :  { %852 = vmatpush.bf16.msra.mxu0 %v1904_v26  ;;  %818 = vmatmul.bf16.vlgmr.msrb.gmra.mxu1 %v3258_v39  ;;  %v2697_v26 = vld [vmem:[%s4229_s3 + $0x2a4] sm:$0xf]  ;;  %v2171_v4 = vld [vmem:[%s4231_s2 + $0x60] sm:$0xf]  ;;  %v2524_v6 = vld [vmem:[%s4231_s2 + $0x64] sm:$0xf0] }
  0x45   :  { %866 = vmatpush.bf16.msra.mxu1 %v1968_v29  ;;  %832 = vmatmul.bf16.vlgmr.msrb.gmra.mxu2 %v3037_v58  ;;  %v2669_v58 = vld [vmem:[%s4229_s3 + $0x1c4] sm:$0xf]  ;;  %v1928_v29 = vor.u32 %v2665_v20, %v1925_v22  ;;  %v2235_v7 = vld [vmem:[%s4231_s2 + $0xe0] sm:$0xf]  ;;  %v2540_v9 = vld [vmem:[%s4231_s2 + $0xe4] sm:$0xf0] }
  0x46   :  { %880 = vmatpush.bf16.msra.mxu2 %v2032_v30  ;;  %846 = vmatmul.bf16.vlgmr.msrb.gmra.mxu3 %v3061_v5  ;;  %v1941_v5 = vld [vmem:[%s4229_s3 + $0x1c8] sm:$0xf0]  ;;  %v1992_v30 = vor.u32 %v2681_v24, %v1989_v25  ;;  %v2299_v10 = vld [vmem:[%s4231_s2 + $0x160] sm:$0xf]  ;;  %v2556_v12 = vld [vmem:[%s4231_s2 + $0x164] sm:$0xf0] }
  0x47   :  { %894 = vmatpush.bf16.msra.mxu3 %v2096_v34  ;;  %v1944_v2 = vor.u32 %v2669_v58, %v1941_v5  ;;  %v2056_v34 = vor.u32 %v2697_v26, %v2053_v27  ;;  %v2307_v58 = vld [vmem:[%s4231_s2 + $0x170] sm:$0xf]  ;;  %v2363_v13 = vld [vmem:[%s4231_s2 + $0x1e0] sm:$0xf]  ;;  %v2572_v14 = vld [vmem:[%s4231_s2 + $0x1e4] sm:$0xf0] }
  0x48   :  { %853 = vmatpush.bf16.msra.mxu0 %v1896_v42  ;;  %v1856_v42 = vor.u32 %v2647_v31, %v1853_v32  ;;  %v2163_v18 = vld [vmem:[%s4231_s2 + $0x50] sm:$0xf]  ;;  %v2522_v19 = vld [vmem:[%s4231_s2 + $0x54] sm:$0xf0]  ;;  %v2536_v31 = vld [vmem:[%s4231_s2 + $0xc4] sm:$0xf0] }
  0x49   :  { %867 = vmatpush.bf16.msra.mxu1 %v1960_v43  ;;  %v2645_v43 = vld [vmem:[%s4229_s3 + $0x104] sm:$0xf]  ;;  %v2227_v20 = vld [vmem:[%s4231_s2 + $0xd0] sm:$0xf]  ;;  %v2538_v22 = vld [vmem:[%s4231_s2 + $0xd4] sm:$0xf0]  ;;  %v2164_v27 = vor.u32 %v2522_v19, %v2163_v18 }
  0x4a   :  { %881 = vmatpush.bf16.msra.mxu2 %v2024_v44  ;;  %v1845_v44 = vld [vmem:[%s4229_s3 + $0x108] sm:$0xf0]  ;;  %v2291_v24 = vld [vmem:[%s4231_s2 + $0x150] sm:$0xf]  ;;  %v2554_v25 = vld [vmem:[%s4231_s2 + $0x154] sm:$0xf0] }
  0x4b   :  { %895 = vmatpush.bf16.msra.mxu3 %v2088_v48  ;;  %v1909_v48 = vld [vmem:[%s4229_s3 + $0x188] sm:$0xf0]  ;;  %v1848_v57 = vor.u32 %v2645_v43, %v1845_v44  ;;  %v2570_v26 = vld [vmem:[%s4231_s2 + $0x1d4] sm:$0xf0]  ;;  %v2283_v32 = vld [vmem:[%s4231_s2 + $0x140] sm:$0xf] }
  0x4c   :  { %854 = vmatpush.bf16.msra.mxu0 %v1888_v54  ;;  %v2179_v54 = vld [vmem:[%s4231_s2 + $0x70] sm:$0xf]  ;;  %v1912_v5 = vor.u32 %v2661_v47, %v1909_v48  ;;  %v2552_v33 = vld [vmem:[%s4231_s2 + $0x144] sm:$0xf0]  ;;  %v2550_v47 = vld [vmem:[%s4231_s2 + $0x134] sm:$0xf0] }
  0x4d   :  { %868 = vmatpush.bf16.msra.mxu1 %v1952_v55  ;;  %v2526_v55 = vld [vmem:[%s4231_s2 + $0x74] sm:$0xf0]  ;;  %v2568_v36 = vld [vmem:[%s4231_s2 + $0x1c4] sm:$0xf0]  ;;  %v2284_v40 = vor.u32 %v2552_v33, %v2283_v32  ;;  %v2147_v41 = vld [vmem:[%s4231_s2 + $0x30] sm:$0xf] }
  0x4e   :  { %882 = vmatpush.bf16.msra.mxu2 %v2016_v56  ;;  %v2243_v56 = vld [vmem:[%s4231_s2 + $0xf0] sm:$0xf]  ;;  %v2566_v49 = vld [vmem:[%s4231_s2 + $0x1b4] sm:$0xf0]  ;;  %v2139_v53 = vld [vmem:[%s4231_s2 + $0x20] sm:$0xf] }
  0x4f   :  { %896 = vmatpush.bf16.msra.mxu3 %v2080_v60  ;;  %v2558_v60 = vld [vmem:[%s4231_s2 + $0x174] sm:$0xf0]  ;;  %v2211_v43 = vld [vmem:[%s4231_s2 + $0xb0] sm:$0xf]  ;;  %v2107_v33 = vld [vmem:[%s4232_s0 + $0x8] sm:$0xf] }
  0x50   :  { %855 = vmatpush.bf16.msra.mxu0 %v1880_v1  ;;  %v2180_v1 = vor.u32 %v2526_v55, %v2179_v54  ;;  %v2339_v48 = vld [vmem:[%s4231_s2 + $0x1b0] sm:$0xf]  ;;  %v2516_v54 = vld [vmem:[%s4231_s2 + $0x24] sm:$0xf0]  ;;  %v2203_v55 = vld [vmem:[%s4231_s2 + $0xa0] sm:$0xf] }
  0x51   :  { %869 = vmatpush.bf16.msra.mxu1 %v1944_v2  ;;  %v2244_v2 = vor.u32 %v2542_v59, %v2243_v56  ;;  %v2340_v56 = vor.u32 %v2566_v49, %v2339_v48  ;;  %v2267_v59 = vld [vmem:[%s4231_s2 + $0x120] sm:$0xf] }
  0x52   :  { %883 = vmatpush.bf16.msra.mxu2 %v2008_v3  ;;  %v2308_v3 = vor.u32 %v2558_v60, %v2307_v58  ;;  %v2548_v58 = vld [vmem:[%s4231_s2 + $0x124] sm:$0xf0]  ;;  %v2331_v60 = vld [vmem:[%s4231_s2 + $0x1a0] sm:$0xf] }
  0x53   :  { %897 = vmatpush.bf16.msra.mxu3 %v2072_v8  ;;  %v2372_v8 = vor.u32 %v2574_v63, %v2371_v62  ;;  %v2131_v62 = vld [vmem:[%s4231_s2 + $0x10] sm:$0xf] }
  0x54   :  { %856 = vmatpush.bf16.msra.mxu0 %v1872_v15  ;;  %v2172_v15 = vor.u32 %v2524_v6, %v2171_v4  ;;  %v2259_v6 = vld [vmem:[%s4231_s2 + $0x110] sm:$0xf] }
  0x55   :  { %870 = vmatpush.bf16.msra.mxu1 %v1936_v16  ;;  %v2236_v16 = vor.u32 %v2540_v9, %v2235_v7  ;;  %v2546_v7 = vld [vmem:[%s4231_s2 + $0x114] sm:$0xf0] }
  0x56   :  { %884 = vmatpush.bf16.msra.mxu2 %v2000_v17  ;;  %v2300_v17 = vor.u32 %v2556_v12, %v2299_v10  ;;  %v2562_v9 = vld [vmem:[%s4231_s2 + $0x194] sm:$0xf0]  ;;  %v2123_v10 = vld [vmem:[%s4231_s2] sm:$0xf]  ;;  %v2512_v12 = vld [vmem:[%s4231_s2 + $0x4] sm:$0xf0]  ;;  %v2260_v19 = vor.u32 %v2546_v7, %v2259_v6 }
  0x57   :  { %898 = vmatpush.bf16.msra.mxu3 %v2064_v21  ;;  %v2364_v21 = vor.u32 %v2572_v14, %v2363_v13  ;;  %v2187_v14 = vld [vmem:[%s4231_s2 + $0x80] sm:$0xf] }
  0x58   :  { %857 = vmatpush.bf16.msra.mxu0 %v1864_v28  ;;  %v2228_v28 = vor.u32 %v2538_v22, %v2227_v20  ;;  %v2315_v20 = vld [vmem:[%s4231_s2 + $0x180] sm:$0xf]  ;;  %v2435_v22 = vld [vmem:[%s4231_s2 + $0x270] sm:$0xf] }
  0x59   :  { %871 = vmatpush.bf16.msra.mxu1 %v1928_v29  ;;  %v2292_v29 = vor.u32 %v2554_v25, %v2291_v24  ;;  %v2590_v25 = vld [vmem:[%s4231_s2 + $0x274] sm:$0xf0] }
  0x5a   :  { %885 = vmatpush.bf16.msra.mxu2 %v1992_v30  ;;  %v2219_v30 = vld [vmem:[%s4231_s2 + $0xc0] sm:$0xf] }
  0x5b   :  { %899 = vmatpush.bf16.msra.mxu3 %v2056_v34  ;;  %v2347_v34 = vld [vmem:[%s4231_s2 + $0x1c0] sm:$0xf]  ;;  %v2220_v38 = vor.u32 %v2536_v31, %v2219_v30 }
  0x5c   :  { %858 = vmatpush.bf16.msra.mxu0 %v1856_v42  ;;  %v2518_v42 = vld [vmem:[%s4231_s2 + $0x34] sm:$0xf0]  ;;  %v2348_v44 = vor.u32 %v2568_v36, %v2347_v34  ;;  %v2099_v30 = vld [vmem:[%s4232_s0] sm:$0xf]  ;;  %v2505_v36 = vld [vmem:[%s4232_s0 + $0x4] sm:$0xf] }
  0x5d   :  { %872 = vmatpush.bf16.msra.mxu1 %v1920_v45  ;;  %v2534_v45 = vld [vmem:[%s4231_s2 + $0xb4] sm:$0xf0]  ;;  %v2509_v34 = vld [vmem:[%s4232_s0 + $0x1c] sm:$0xf0] }
  0x5e   :  { %886 = vmatpush.bf16.msra.mxu2 %v1984_v46  ;;  %v2275_v46 = vld [vmem:[%s4231_s2 + $0x130] sm:$0xf]  ;;  %v2212_v51 = vor.u32 %v2534_v45, %v2211_v43  ;;  %v2427_v45 = vld [vmem:[%s4231_s2 + $0x260] sm:$0xf] }
  0x5f   :  { %900 = vmatpush.bf16.msra.mxu3 %v2048_v50  ;;  %v2148_v50 = vor.u32 %v2518_v42, %v2147_v41  ;;  %v2276_v52 = vor.u32 %v2550_v47, %v2275_v46  ;;  %v2506_v41 = vld [vmem:[%s4232_s0 + $0xc] sm:$0xf]  ;;  %v2109_v42 = vld [vmem:[%s4232_s0 + $0x20] sm:$0xf0]  ;;  %v2588_v46 = vld [vmem:[%s4231_s2 + $0x264] sm:$0xf0] }
  0x60   :  { %859 = vmatpush.bf16.msra.mxu0 %v1848_v57  ;;  %v2532_v57 = vld [vmem:[%s4231_s2 + $0xa4] sm:$0xf0]  ;;  %v2491_v47 = vld [vmem:[%s4231_s2 + $0x2e0] sm:$0xf] }
  0x61   :  { %873 = vmatpush.bf16.msra.mxu1 %v1912_v5  ;;  %v2564_v5 = vld [vmem:[%s4231_s2 + $0x1a4] sm:$0xf0]  ;;  %v2204_v63 = vor.u32 %v2532_v57, %v2203_v55  ;;  %v2539_v55 = vld [vmem:[%s4231_s2 + $0xe4] sm:$0xf]  ;;  %v3688_v57 = vor.u32 %v2506_v41, %v2109_v42  ;;  %v2205_v41 = vld [vmem:[%s4231_s2 + $0xa8] sm:$0xf0] }
  0x62   :  { %887 = vmatpush.bf16.msra.mxu2 %v1976_v61  ;;  %v2140_v61 = vor.u32 %v2516_v54, %v2139_v53  ;;  %v2332_v4 = vor.u32 %v2564_v5, %v2331_v60  ;;  %v3678_v53 = vor.u32 %v2509_v34, %v2107_v33  ;;  %v2419_v5 = vld [vmem:[%s4231_s2 + $0x250] sm:$0xf]  ;;  %v2459_v33 = vld [vmem:[%s4231_s2 + $0x2a0] sm:$0xf] }
  0x63   :  { %901 = vmatpush.bf16.msra.mxu3 %v2040_v0  ;;  %860 = vmatmul.bf16.vlgmr.msra.gmra.mxu0 %v3075_v11  ;;  %v2355_v11 = vld [vmem:[%s4231_s2 + $0x1d0] sm:$0xf]  ;;  %v2268_v0 = vor.u32 %v2548_v58, %v2267_v59  ;;  %v2428_v59 = vor.u32 %v2588_v46, %v2427_v45  ;;  %v2578_v46 = vld [vmem:[%s4231_s2 + $0x214] sm:$0xf0] }
  0x64   :  { %1418 = vmatpush.bf16.msrb.mxu0 %v2180_v1  ;;  %874 = vmatmul.bf16.vlgmr.msra.gmra.mxu1 %v3103_v23  ;;  %v2155_v23 = vld [vmem:[%s4231_s2 + $0x40] sm:$0xf]  ;;  %v2514_v1 = vld [vmem:[%s4231_s2 + $0x14] sm:$0xf0]  ;;  %v2387_v45 = vld [vmem:[%s4231_s2 + $0x210] sm:$0xf] }
  0x65   :  { %1432 = vmatpush.bf16.msrb.mxu1 %v2244_v2  ;;  %888 = vmatmul.bf16.vlgmr.msra.gmra.mxu2 %v3247_v35  ;;  %v2520_v35 = vld [vmem:[%s4231_s2 + $0x44] sm:$0xf0]  ;;  %v2195_v2 = vld [vmem:[%s4231_s2 + $0x90] sm:$0xf]  ;;  %v2132_v13 = vor.u32 %v2514_v1, %v2131_v62  ;;  %v2521_v1 = vld [vmem:[%s4231_s2 + $0x54] sm:$0xf] }
  0x66   :  { %1446 = vmatpush.bf16.msrb.mxu2 %v2308_v3  ;;  %902 = vmatmul.bf16.vlgmr.msra.gmra.mxu3 %v3258_v39  ;;  %v2356_v39 = vor.u32 %v2570_v26, %v2355_v11  ;;  %v2156_v37 = vor.u32 %v2520_v35, %v2155_v23  ;;  %v2530_v3 = vld [vmem:[%s4231_s2 + $0x94] sm:$0xf0]  ;;  %v2499_v11 = vld [vmem:[%s4231_s2 + $0x2f0] sm:$0xf]  ;;  %v2124_v23 = vor.u32 %v2512_v12, %v2123_v10  ;;  %v2245_v35 = vld [vmem:[%s4231_s2 + $0xf8] sm:$0xf0] }
  0x67   :  { %1460 = vmatpush.bf16.msrb.mxu3 %v2372_v8  ;;  %v2323_v8 = vld [vmem:[%s4231_s2 + $0x190] sm:$0xf]  ;;  %v2196_v18 = vor.u32 %v2530_v3, %v2195_v2  ;;  %v2606_v26 = vld [vmem:[%s4231_s2 + $0x2f4] sm:$0xf0]  ;;  %v2165_v2 = vld [vmem:[%s4231_s2 + $0x58] sm:$0xf0] }
  0x68   :  { %1419 = vmatpush.bf16.msrb.mxu0 %v2172_v15  ;;  %v2528_v15 = vld [vmem:[%s4231_s2 + $0x84] sm:$0xf0]  ;;  %v2324_v24 = vor.u32 %v2562_v9, %v2323_v8  ;;  %v2500_v43 = vor.u32 %v2606_v26, %v2499_v11  ;;  %v2483_v62 = vld [vmem:[%s4231_s2 + $0x2d0] sm:$0xf]  ;;  %v2537_v3 = vld [vmem:[%s4231_s2 + $0xd4] sm:$0xf]  ;;  %v2168_v8 = vor.u32 %v2521_v1, %v2165_v2 }
  0x69   :  { %1433 = vmatpush.bf16.msrb.mxu1 %v2236_v16  ;;  %v2251_v16 = vld [vmem:[%s4231_s2 + $0x100] sm:$0xf]  ;;  %v2188_v31 = vor.u32 %v2528_v15, %v2187_v14  ;;  %v2584_v10 = vld [vmem:[%s4231_s2 + $0x244] sm:$0xf0]  ;;  %v2519_v15 = vld [vmem:[%s4231_s2 + $0x44] sm:$0xf] }
  0x6a   :  { %1447 = vmatpush.bf16.msrb.mxu2 %v2300_v17  ;;  %v2544_v17 = vld [vmem:[%s4231_s2 + $0x104] sm:$0xf0]  ;;  %v2411_v9 = vld [vmem:[%s4231_s2 + $0x240] sm:$0xf]  ;;  %v2598_v26 = vld [vmem:[%s4231_s2 + $0x2b4] sm:$0xf0] }
  0x6b   :  { %1461 = vmatpush.bf16.msrb.mxu3 %v2364_v21  ;;  %v2560_v21 = vld [vmem:[%s4231_s2 + $0x184] sm:$0xf0]  ;;  %v2252_v32 = vor.u32 %v2544_v17, %v2251_v16  ;;  %v2475_v12 = vld [vmem:[%s4231_s2 + $0x2c0] sm:$0xf]  ;;  %v2157_v16 = vld [vmem:[%s4231_s2 + $0x48] sm:$0xf0] }
  0x6c   :  { %1420 = vmatpush.bf16.msrb.mxu0 %v2164_v27  ;;  %v2525_v27 = vld [vmem:[%s4231_s2 + $0x74] sm:$0xf]  ;;  %v2600_v14 = vld [vmem:[%s4231_s2 + $0x2c4] sm:$0xf0]  ;;  %v2535_v17 = vld [vmem:[%s4231_s2 + $0xc4] sm:$0xf] }
  0x6d   :  { %1434 = vmatpush.bf16.msrb.mxu1 %v2228_v28  ;;  %v2181_v28 = vld [vmem:[%s4231_s2 + $0x78] sm:$0xf0]  ;;  %v2125_v1 = vld [vmem:[%s4231_s2 + $0x8] sm:$0xf0] }
  0x6e   :  { %1448 = vmatpush.bf16.msrb.mxu2 %v2292_v29  ;;  %v2541_v29 = vld [vmem:[%s4231_s2 + $0xf4] sm:$0xf] }
  0x6f   :  { %1462 = vmatpush.bf16.msrb.mxu3 %v2356_v39  ;;  %v2508_v39 = vld [vmem:[%s4232_s0 + $0x14] sm:$0xf0]  ;;  %v2248_v48 = vor.u32 %v2541_v29, %v2245_v35  ;;  %v2533_v29 = vld [vmem:[%s4231_s2 + $0xb4] sm:$0xf] }
  0x70   :  { %1421 = vmatpush.bf16.msrb.mxu0 %v2156_v37  ;;  %v2316_v37 = vor.u32 %v2560_v21, %v2315_v20  ;;  %v3667_v49 = vor.u32 %v2508_v39, %v2099_v30  ;;  %v2476_v20 = vor.u32 %v2600_v14, %v2475_v12  ;;  %v2160_v21 = vor.u32 %v2519_v15, %v2157_v16  ;;  %v2589_v12 = vld [vmem:[%s4231_s2 + $0x274] sm:$0xf] }
  0x71   :  { %1435 = vmatpush.bf16.msrb.mxu1 %v2220_v38  ;;  %v2436_v38 = vor.u32 %v2590_v25, %v2435_v22  ;;  %v2403_v22 = vld [vmem:[%s4231_s2 + $0x230] sm:$0xf]  ;;  %v2605_v14 = vld [vmem:[%s4231_s2 + $0x2f4] sm:$0xf] }
  0x72   :  { %1449 = vmatpush.bf16.msrb.mxu2 %v2284_v40  ;;  %v2101_v40 = vld [vmem:[%s4232_s0 + $0x18] sm:$0xf0]  ;;  %v2467_v25 = vld [vmem:[%s4231_s2 + $0x2b0] sm:$0xf] }
  0x73   :  { %1463 = vmatpush.bf16.msrb.mxu3 %v2348_v44  ;;  %v2184_v44 = vor.u32 %v2525_v27, %v2181_v28  ;;  %v3680_v54 = vor.u32 %v2505_v36, %v2101_v40  ;;  %v2517_v27 = vld [vmem:[%s4231_s2 + $0x34] sm:$0xf]  ;;  %v2149_v28 = vld [vmem:[%s4231_s2 + $0x38] sm:$0xf0]  ;;  %v2468_v30 = vor.u32 %v2598_v26, %v2467_v25  ;;  %v2596_v36 = vld [vmem:[%s4231_s2 + $0x2a4] sm:$0xf0] }
  0x74   :  { %1422 = vmatpush.bf16.msrb.mxu0 %v2148_v50  ;;  %v2604_v50 = vld [vmem:[%s4231_s2 + $0x2e4] sm:$0xf0]  ;;  %v2152_v39 = vor.u32 %v2517_v27, %v2149_v28  ;;  %v2531_v40 = vld [vmem:[%s4231_s2 + $0xa4] sm:$0xf]  ;;  %v2301_v27 = vld [vmem:[%s4231_s2 + $0x168] sm:$0xf0] }
  0x75   :  { %1436 = vmatpush.bf16.msrb.mxu1 %v2212_v51  ;;  %v2523_v51 = vld [vmem:[%s4231_s2 + $0x64] sm:$0xf]  ;;  %v2492_v58 = vor.u32 %v2604_v50, %v2491_v47  ;;  %v2451_v47 = vld [vmem:[%s4231_s2 + $0x290] sm:$0xf]  ;;  %v2594_v50 = vld [vmem:[%s4231_s2 + $0x294] sm:$0xf0] }
  0x76   :  { %1450 = vmatpush.bf16.msrb.mxu2 %v2276_v52  ;;  %v2173_v52 = vld [vmem:[%s4231_s2 + $0x68] sm:$0xf0]  ;;  %v2555_v26 = vld [vmem:[%s4231_s2 + $0x164] sm:$0xf] }
  0x77   :  { %1464 = vmatpush.bf16.msrb.mxu3 %v2340_v56  ;;  %v2237_v56 = vld [vmem:[%s4231_s2 + $0xe8] sm:$0xf0]  ;;  %v2176_v60 = vor.u32 %v2523_v51, %v2173_v52  ;;  %v2513_v51 = vld [vmem:[%s4231_s2 + $0x14] sm:$0xf]  ;;  %v2133_v52 = vld [vmem:[%s4231_s2 + $0x18] sm:$0xf0] }
  0x78   :  { %1423 = vmatpush.bf16.msrb.mxu0 %v2140_v61  ;;  %v2586_v61 = vld [vmem:[%s4231_s2 + $0x254] sm:$0xf0]  ;;  %v2571_v28 = vld [vmem:[%s4231_s2 + $0x1e4] sm:$0xf] }
  0x79   :  { %1437 = vmatpush.bf16.msrb.mxu1 %v2204_v63  ;;  %v2240_v63 = vor.u32 %v2539_v55, %v2237_v56  ;;  %v2420_v6 = vor.u32 %v2586_v61, %v2419_v5  ;;  %v2529_v55 = vld [vmem:[%s4231_s2 + $0x94] sm:$0xf]  ;;  %v2197_v56 = vld [vmem:[%s4231_s2 + $0x98] sm:$0xf0]  ;;  %v2443_v5 = vld [vmem:[%s4231_s2 + $0x280] sm:$0xf]  ;;  %v2452_v61 = vor.u32 %v2594_v50, %v2451_v47 }
  0x7a   :  { %1451 = vmatpush.bf16.msrb.mxu2 %v2268_v0  ;;  %v2602_v0 = vld [vmem:[%s4231_s2 + $0x2d4] sm:$0xf0]  ;;  %v2200_v2 = vor.u32 %v2529_v55, %v2197_v56  ;;  %v2485_v47 = vld [vmem:[%s4231_s2 + $0x2d8] sm:$0xf0]  ;;  %v2567_v55 = vld [vmem:[%s4231_s2 + $0x1c4] sm:$0xf] }
  0x7b   :  { %1465 = vmatpush.bf16.msrb.mxu3 %v2332_v4  ;;  %v2229_v4 = vld [vmem:[%s4231_s2 + $0xd8] sm:$0xf0]  ;;  %v2484_v7 = vor.u32 %v2602_v0, %v2483_v62  ;;  %v2136_v62 = vor.u32 %v2513_v51, %v2133_v52  ;;  %v2511_v0 = vld [vmem:[%s4231_s2 + $0x4] sm:$0xf]  ;;  %v2285_v52 = vld [vmem:[%s4231_s2 + $0x148] sm:$0xf0] }
  0x7c   :  { %1424 = vmatpush.bf16.msrb.mxu0 %v2132_v13  ;;  %v2232_v13 = vor.u32 %v2537_v3, %v2229_v4  ;;  %v2527_v3 = vld [vmem:[%s4231_s2 + $0x84] sm:$0xf]  ;;  %v2189_v4 = vld [vmem:[%s4231_s2 + $0x88] sm:$0xf0]  ;;  %v2128_v16 = vor.u32 %v2511_v0, %v2125_v1  ;;  %v2549_v0 = vld [vmem:[%s4231_s2 + $0x134] sm:$0xf] }
  0x7d   :  { %1438 = vmatpush.bf16.msrb.mxu1 %v2196_v18  ;;  %v2221_v18 = vld [vmem:[%s4231_s2 + $0xc8] sm:$0xf0]  ;;  %v2277_v1 = vld [vmem:[%s4231_s2 + $0x138] sm:$0xf0] }
  0x7e   :  { %1452 = vmatpush.bf16.msrb.mxu2 %v2260_v19  ;;  %v2412_v19 = vor.u32 %v2584_v10, %v2411_v9  ;;  %v2224_v11 = vor.u32 %v2535_v17, %v2221_v18  ;;  %v2373_v9 = vld [vmem:[%s4231_s2 + $0x1f8] sm:$0xf0]  ;;  %v2115_v18 = vld [vmem:[%s4232_s0 + $0x10] sm:$0xf]  ;;  %v2349_v56 = vld [vmem:[%s4231_s2 + $0x1c8] sm:$0xf0] }
  0x7f   :  { %1466 = vmatpush.bf16.msrb.mxu3 %v2324_v24  ;;  %v2582_v24 = vld [vmem:[%s4231_s2 + $0x234] sm:$0xf0]  ;;  %v2501_v17 = vld [vmem:[%s4231_s2 + $0x2f8] sm:$0xf0] }
  0x80   :  { %1425 = vmatpush.bf16.msrb.mxu0 %v2124_v23  ;;  %v2213_v23 = vld [vmem:[%s4231_s2 + $0xb8] sm:$0xf0]  ;;  %v2404_v35 = vor.u32 %v2582_v24, %v2403_v22  ;;  %v2507_v22 = vld [vmem:[%s4232_s0 + $0x14] sm:$0xf]  ;;  %v2117_v24 = vld [vmem:[%s4232_s0 + $0x28] sm:$0xf0] }
  0x81   :  { %1439 = vmatpush.bf16.msrb.mxu1 %v2188_v31  ;;  %v2395_v31 = vld [vmem:[%s4231_s2 + $0x220] sm:$0xf]  ;;  %v2216_v34 = vor.u32 %v2533_v29, %v2213_v23  ;;  %v2504_v29 = vor.u32 %v2605_v14, %v2501_v17  ;;  %v2547_v14 = vld [vmem:[%s4231_s2 + $0x124] sm:$0xf] }
  0x82   :  { %1453 = vmatpush.bf16.msrb.mxu2 %v2252_v32  ;;  %v2580_v32 = vld [vmem:[%s4231_s2 + $0x224] sm:$0xf0] }
  0x83   :  { %1467 = vmatpush.bf16.msrb.mxu3 %v2316_v37  ;;  %1426 = vmatmul.bf16.vlgmr.msrb.gmra.mxu0 %v3667_v49  ;;  %v2515_v37 = vld [vmem:[%s4231_s2 + $0x24] sm:$0xf]  ;;  %v2396_v42 = vor.u32 %v2580_v32, %v2395_v31  ;;  %v3894_v31 = vor.u32 %v2507_v22, %v2117_v24  ;;  %v2461_v22 = vld [vmem:[%s4231_s2 + $0x2a8] sm:$0xf0] }
  0x84   :  { %1474 = vmatpush.bf16.msra.mxu0 %v2436_v38  ;;  %1440 = vmatmul.bf16.vlgmr.msrb.gmra.mxu1 %v3680_v54  ;;  %v2141_v38 = vld [vmem:[%s4231_s2 + $0x28] sm:$0xf0]  ;;  %v2603_v32 = vld [vmem:[%s4231_s2 + $0x2e4] sm:$0xf] }
  0x85   :  { %1488 = vmatpush.bf16.msra.mxu1 %v2500_v43  ;;  %1454 = vmatmul.bf16.vlgmr.msrb.gmra.mxu2 %v3678_v53  ;;  %v2460_v43 = vor.u32 %v2596_v36, %v2459_v33  ;;  %v2493_v33 = vld [vmem:[%s4231_s2 + $0x2e8] sm:$0xf0] }
  0x86   :  { %1502 = vmatpush.bf16.msra.mxu2 %v2184_v44  ;;  %1468 = vmatmul.bf16.vlgmr.msrb.gmra.mxu3 %v3688_v57  ;;  %v2144_v44 = vor.u32 %v2515_v37, %v2141_v38  ;;  %v2553_v38 = vld [vmem:[%s4231_s2 + $0x154] sm:$0xf] }
  0x87   :  { %1516 = vmatpush.bf16.msra.mxu3 %v2248_v48  ;;  %v2208_v48 = vor.u32 %v2531_v40, %v2205_v41  ;;  %v2293_v40 = vld [vmem:[%s4231_s2 + $0x158] sm:$0xf0]  ;;  %v2569_v41 = vld [vmem:[%s4231_s2 + $0x1d4] sm:$0xf] }
  0x88   :  { %1475 = vmatpush.bf16.msra.mxu0 %v2428_v59  ;;  %v2388_v59 = vor.u32 %v2578_v46, %v2387_v45  ;;  %v2421_v45 = vld [vmem:[%s4231_s2 + $0x258] sm:$0xf0]  ;;  %v2601_v46 = vld [vmem:[%s4231_s2 + $0x2d4] sm:$0xf] }
  0x89   :  { %1489 = vmatpush.bf16.msra.mxu1 %v2492_v58  ;;  %v2379_v58 = vld [vmem:[%s4231_s2 + $0x200] sm:$0xf] }
  0x8a   :  { %1503 = vmatpush.bf16.msra.mxu2 %v2176_v60  ;;  %v2576_v60 = vld [vmem:[%s4231_s2 + $0x204] sm:$0xf0] }
  0x8b   :  { %1517 = vmatpush.bf16.msra.mxu3 %v2240_v63  ;;  %v2592_v63 = vld [vmem:[%s4231_s2 + $0x284] sm:$0xf0]  ;;  %v2380_v10 = vor.u32 %v2576_v60, %v2379_v58  ;;  %v2413_v58 = vld [vmem:[%s4231_s2 + $0x248] sm:$0xf0]  ;;  %v2599_v60 = vld [vmem:[%s4231_s2 + $0x2c4] sm:$0xf] }
  0x8c   :  { %1476 = vmatpush.bf16.msra.mxu0 %v2420_v6  ;;  %v2557_v6 = vld [vmem:[%s4231_s2 + $0x174] sm:$0xf]  ;;  %v2444_v15 = vor.u32 %v2592_v63, %v2443_v5  ;;  %v2477_v5 = vld [vmem:[%s4231_s2 + $0x2c8] sm:$0xf0] }
  0x8d   :  { %1490 = vmatpush.bf16.msra.mxu1 %v2484_v7  ;;  %v2309_v7 = vld [vmem:[%s4231_s2 + $0x178] sm:$0xf0] }
  0x8e   :  { %1504 = vmatpush.bf16.msra.mxu2 %v2168_v8  ;;  %v2573_v8 = vld [vmem:[%s4231_s2 + $0x1f4] sm:$0xf] }
  0x8f   :  { %1518 = vmatpush.bf16.msra.mxu3 %v2232_v13  ;;  %v2437_v13 = vld [vmem:[%s4231_s2 + $0x278] sm:$0xf0]  ;;  %v2376_v25 = vor.u32 %v2573_v8, %v2373_v9  ;;  %v2597_v8 = vld [vmem:[%s4231_s2 + $0x2b4] sm:$0xf] }
  0x90   :  { %1477 = vmatpush.bf16.msra.mxu0 %v2412_v19  ;;  %v2510_v19 = vld [vmem:[%s4232_s0 + $0x24] sm:$0xf0]  ;;  %v2469_v9 = vld [vmem:[%s4231_s2 + $0x2b8] sm:$0xf0] }
  0x91   :  { %1491 = vmatpush.bf16.msra.mxu1 %v2476_v20  ;;  %v2192_v20 = vor.u32 %v2527_v3, %v2189_v4  ;;  %v3883_v23 = vor.u32 %v2510_v19, %v2115_v18  ;;  %v2480_v3 = vor.u32 %v2599_v60, %v2477_v5  ;;  %v2341_v4 = vld [vmem:[%s4231_s2 + $0x1b8] sm:$0xf0]  ;;  %v2472_v17 = vor.u32 %v2597_v8, %v2469_v9  ;;  %v2333_v18 = vld [vmem:[%s4231_s2 + $0x1a8] sm:$0xf0]  ;;  %v2579_v19 = vld [vmem:[%s4231_s2 + $0x224] sm:$0xf] }
  0x92   :  { %1505 = vmatpush.bf16.msra.mxu2 %v2160_v21  ;;  %v2312_v21 = vor.u32 %v2557_v6, %v2309_v7  ;;  %v2581_v6 = vld [vmem:[%s4231_s2 + $0x234] sm:$0xf]  ;;  %v2405_v7 = vld [vmem:[%s4231_s2 + $0x238] sm:$0xf0] }
  0x93   :  { %1519 = vmatpush.bf16.msra.mxu3 %v2224_v11  ;;  %v2440_v11 = vor.u32 %v2589_v12, %v2437_v13  ;;  %v2408_v13 = vor.u32 %v2581_v6, %v2405_v7  ;;  %v1608_v7 = vld [vmem:[%s4234_s5 + $0x40] sm:$0xff]  ;;  %v1607_v8 = vld [vmem:[%s4234_s5 + $0x38] sm:$0xff] }
  0x94   :  { %1478 = vmatpush.bf16.msra.mxu0 %v2404_v35  ;;  %v2365_v35 = vld [vmem:[%s4231_s2 + $0x1e8] sm:$0xf0] }
  0x95   :  { %1492 = vmatpush.bf16.msra.mxu1 %v2468_v30  ;;  %v2587_v30 = vld [vmem:[%s4231_s2 + $0x264] sm:$0xf]  ;;  %v2368_v36 = vor.u32 %v2571_v28, %v2365_v35  ;;  %v2561_v28 = vld [vmem:[%s4231_s2 + $0x194] sm:$0xf]  ;;  %v2325_v35 = vld [vmem:[%s4231_s2 + $0x198] sm:$0xf0] }
  0x96   :  { %1506 = vmatpush.bf16.msra.mxu2 %v2152_v39  ;;  %v2429_v39 = vld [vmem:[%s4231_s2 + $0x268] sm:$0xf0] }
  0x97   :  { %1520 = vmatpush.bf16.msra.mxu3 %v2216_v34  ;;  %v2304_v34 = vor.u32 %v2555_v26, %v2301_v27  ;;  %v2432_v37 = vor.u32 %v2587_v30, %v2429_v39  ;;  %v2545_v26 = vld [vmem:[%s4231_s2 + $0x114] sm:$0xf]  ;;  %v2261_v27 = vld [vmem:[%s4231_s2 + $0x118] sm:$0xf0] }
  0x98   :  { %1479 = vmatpush.bf16.msra.mxu0 %v2396_v42  ;;  %v2496_v42 = vor.u32 %v2603_v32, %v2493_v33  ;;  %v2577_v30 = vld [vmem:[%s4231_s2 + $0x214] sm:$0xf]  ;;  %v2389_v39 = vld [vmem:[%s4231_s2 + $0x218] sm:$0xf0] }
  0x99   :  { %1493 = vmatpush.bf16.msra.mxu1 %v2460_v43  ;;  %v2357_v43 = vld [vmem:[%s4231_s2 + $0x1d8] sm:$0xf0]  ;;  %v2593_v32 = vld [vmem:[%s4231_s2 + $0x294] sm:$0xf] }
  0x9a   :  { %1507 = vmatpush.bf16.msra.mxu2 %v2144_v44  ;;  %v2585_v44 = vld [vmem:[%s4231_s2 + $0x254] sm:$0xf]  ;;  %v2360_v50 = vor.u32 %v2569_v41, %v2357_v43  ;;  %v2453_v33 = vld [vmem:[%s4231_s2 + $0x298] sm:$0xf0]  ;;  %v2559_v41 = vld [vmem:[%s4231_s2 + $0x184] sm:$0xf] }
  0x9b   :  { %1521 = vmatpush.bf16.msra.mxu3 %v2208_v48  ;;  %v2296_v48 = vor.u32 %v2553_v38, %v2293_v40  ;;  %v2424_v51 = vor.u32 %v2585_v44, %v2421_v45  ;;  %v2543_v38 = vld [vmem:[%s4231_s2 + $0x104] sm:$0xf]  ;;  %v2253_v40 = vld [vmem:[%s4231_s2 + $0x108] sm:$0xf0] }
  0x9c   :  { %1480 = vmatpush.bf16.msra.mxu0 %v2388_v59  ;;  %v2583_v59 = vld [vmem:[%s4231_s2 + $0x244] sm:$0xf]  ;;  %v2317_v43 = vld [vmem:[%s4231_s2 + $0x188] sm:$0xf0] }
  0x9d   :  { %1494 = vmatpush.bf16.msra.mxu1 %v2452_v61  ;;  %v2416_v63 = vor.u32 %v2583_v59, %v2413_v58  ;;  %v2575_v44 = vld [vmem:[%s4231_s2 + $0x204] sm:$0xf]  ;;  %v2381_v45 = vld [vmem:[%s4231_s2 + $0x208] sm:$0xf0] }
  0x9e   :  { %1508 = vmatpush.bf16.msra.mxu2 %v2136_v62  ;;  %v2352_v62 = vor.u32 %v2567_v55, %v2349_v56 }
  0x9f   :  { %1522 = vmatpush.bf16.msra.mxu3 %v2200_v2  ;;  %v2565_v2 = vld [vmem:[%s4231_s2 + $0x1b4] sm:$0xf] }
  0xa0   :  { %1481 = vmatpush.bf16.msra.mxu0 %v2380_v10  ;;  %v2280_v10 = vor.u32 %v2549_v0, %v2277_v1  ;;  %v2344_v12 = vor.u32 %v2565_v2, %v2341_v4  ;;  %v1611_v0 = vld [vmem:[%s4234_s5 + $0x58] sm:$0xff]  ;;  %v1609_v4 = vld [vmem:[%s4234_s5 + $0x48] sm:$0xff] }
  0xa1   :  { %1495 = vmatpush.bf16.msra.mxu1 %v2444_v15  ;;  %v2269_v15 = vld [vmem:[%s4231_s2 + $0x128] sm:$0xf0]  ;;  %v763_v55 = vpop.f32.mrf.mxu1 }
  0xa2   :  { %1509 = vmatpush.bf16.msra.mxu2 %v2128_v16  ;;  %v2563_v16 = vld [vmem:[%s4231_s2 + $0x1a4] sm:$0xf]  ;;  %v2272_v24 = vor.u32 %v2547_v14, %v2269_v15 }
  0xa3   :  { %1523 = vmatpush.bf16.msra.mxu3 %v2192_v20  ;;  %1482 = vmatmul.bf16.vlgmr.msra.gmra.mxu0 %v3883_v23  ;;  %v2397_v20 = vld [vmem:[%s4231_s2 + $0x228] sm:$0xf0] }
  0xa4   :  { %1530 = vmatpush.bf16.msrb.mxu0 %v2312_v21  ;;  %1496 = vmatmul.bf16.vlgmr.msra.gmra.mxu1 %v3894_v31  ;;  %v2595_v21 = vld [vmem:[%s4231_s2 + $0x2a4] sm:$0xf] }
  0xa5   :  { %1544 = vmatpush.bf16.msrb.mxu1 %v2376_v25  ;;  %1510 = vmatmul.bf16.vlgmr.msra.gmra.mxu2 %v3667_v49  ;;  %v2551_v49 = vld [vmem:[%s4231_s2 + $0x144] sm:$0xf]  ;;  %v2336_v25 = vor.u32 %v2563_v16, %v2333_v18  ;;  %v1603_v18 = vld [vmem:[%s4234_s5 + $0x18] sm:$0xff] }
  0xa6   :  { %1558 = vmatpush.bf16.msrb.mxu2 %v2440_v11  ;;  %1524 = vmatmul.bf16.vlgmr.msra.gmra.mxu3 %v3680_v54  ;;  %v2488_v54 = vor.u32 %v2601_v46, %v2485_v47  ;;  %v2288_v61 = vor.u32 %v2551_v49, %v2285_v52  ;;  %v2400_v11 = vor.u32 %v2579_v19, %v2397_v20  ;;  %v2591_v46 = vld [vmem:[%s4231_s2 + $0x284] sm:$0xf]  ;;  %v2445_v47 = vld [vmem:[%s4231_s2 + $0x288] sm:$0xf0]  ;;  %v749_v52 = vpop.f32.mrf.mxu0  ;;  %v1602_v20 = vld [vmem:[%s4234_s5 + $0x10] sm:$0xff] }
  0xa7   :  { %1572 = vmatpush.bf16.msrb.mxu3 %v2504_v29  ;;  %v2464_v29 = vor.u32 %v2595_v21, %v2461_v22  ;;  %v2448_v49 = vor.u32 %v2591_v46, %v2445_v47  ;;  %v1604_v16 = vld [vmem:[%s4234_s5 + $0x20] sm:$0xff] }
  0xa8   :  { %1531 = vmatpush.bf16.msrb.mxu0 %v2304_v34  ;;  %v2264_v34 = vor.u32 %v2545_v26, %v2261_v27  ;;  %v1600_v26 = vld [vmem:[%s4234_s5] sm:$0xff] }
  0xa9   :  { %1545 = vmatpush.bf16.msrb.mxu1 %v2368_v36  ;;  %v2328_v36 = vor.u32 %v2561_v28, %v2325_v35  ;;  %v4056_v59 = vpop.f32.mrf.mxu1  ;;  %v4058_v58 = vpop.f32.mrf.mxu3 }
  0xaa   :  { %1559 = vmatpush.bf16.msrb.mxu2 %v2432_v37  ;;  %v2392_v37 = vor.u32 %v2577_v30, %v2389_v39  ;;  %v1631_v30 = vld [vmem:[%s4234_s5 + $0xf8] sm:$0xff] }
  0xab   :  { %1573 = vmatpush.bf16.msrb.mxu3 %v2496_v42  ;;  %v2456_v42 = vor.u32 %v2593_v32, %v2453_v33  ;;  %v1630_v33 = vld [vmem:[%s4234_s5 + $0xf0] sm:$0xff] }
  0xac   :  { %1532 = vmatpush.bf16.msrb.mxu0 %v2296_v48  ;;  %v2256_v48 = vor.u32 %v2543_v38, %v2253_v40  ;;  %v1628_v38 = vld [vmem:[%s4234_s5 + $0xe0] sm:$0xff] }
  0xad   :  { %1546 = vmatpush.bf16.msrb.mxu1 %v2360_v50  ;;  %v2320_v50 = vor.u32 %v2559_v41, %v2317_v43  ;;  %v1627_v41 = vld [vmem:[%s4234_s5 + $0xd8] sm:$0xff] }
  0xae   :  { %1560 = vmatpush.bf16.msrb.mxu2 %v2424_v51  ;;  %v2384_v51 = vor.u32 %v2575_v44, %v2381_v45  ;;  %v4054_v56 = vpop.f32.mrf.mxu0  ;;  %v1626_v45 = vld [vmem:[%s4234_s5 + $0xd0] sm:$0xff] }
  0xaf   :  { %1574 = vmatpush.bf16.msrb.mxu3 %v2488_v54  ;;  %v777_v54 = vpop.f32.mrf.mxu2  ;;  %v766_v28 = vadd.f32 %v4056_v59, %v4054_v56  ;;  %v4180_v59 = vld [vmem:[%s4235_s4] sm:$0x3] }
  0xb0   :  { %1533 = vmatpush.bf16.msrb.mxu0 %v2288_v61  ;;  %v1613_v61 = vld [vmem:[%s4234_s5 + $0x68] sm:$0xff] }
  0xb1   :  { %1547 = vmatpush.bf16.msrb.mxu1 %v2352_v62  ;;  %v1612_v62 = vld [vmem:[%s4234_s5 + $0x60] sm:$0xff] }
  0xb2   :  { %1561 = vmatpush.bf16.msrb.mxu2 %v2416_v63 }
  0xb3   :  { %1575 = vmatpush.bf16.msrb.mxu3 %v2480_v3  ;;  %v1610_v3 = vld [vmem:[%s4234_s5 + $0x50] sm:$0xff] }
  0xb4   :  { %1534 = vmatpush.bf16.msrb.mxu0 %v2280_v10  ;;  %v1606_v10 = vld [vmem:[%s4234_s5 + $0x30] sm:$0xff] }
  0xb5   :  { %1548 = vmatpush.bf16.msrb.mxu1 %v2344_v12 }
  0xb6   :  { %1562 = vmatpush.bf16.msrb.mxu2 %v2408_v13  ;;  %v1605_v13 = vld [vmem:[%s4234_s5 + $0x28] sm:$0xff] }
  0xb7   :  { %1576 = vmatpush.bf16.msrb.mxu3 %v2472_v17  ;;  %v4060_v60 = vpop.f32.mrf.mxu2  ;;  %v764_v17 = vadd.f32 %v763_v55, %v749_v52  ;;  %v1624_v52 = vld [vmem:[%s4234_s5 + $0xc0] sm:$0xff] }
  0xb8   :  { %1535 = vmatpush.bf16.msrb.mxu0 %v2272_v24 }
  0xb9   :  { %1549 = vmatpush.bf16.msrb.mxu1 %v2336_v25  ;;  %v778_v22 = vadd.f32 %v777_v54, %v764_v17  ;;  %v1601_v25 = vld [vmem:[%s4234_s5 + $0x8] sm:$0xff] }
  0xba   :  { %1563 = vmatpush.bf16.msrb.mxu2 %v2400_v11 }
  0xbb   :  { %1577 = vmatpush.bf16.msrb.mxu3 %v2464_v29  ;;  %v792_v27 = vadd.f32 %v4058_v58, %v778_v22  ;;  %v1623_v58 = vld [vmem:[%s4234_s5 + $0xb8] sm:$0xff] }
  0xbc   :  { %1536 = vmatpush.bf16.msrb.mxu0 %v2264_v34  ;;  %v780_v34 = vadd.f32 %v4060_v60, %v766_v28 }
  0xbd   :  { %1550 = vmatpush.bf16.msrb.mxu1 %v2328_v36 }
  0xbe   :  { %1564 = vmatpush.bf16.msrb.mxu2 %v2392_v37  ;;  %v1629_v37 = vld [vmem:[%s4234_s5 + $0xe8] sm:$0xff] }
  0xbf   :  { %1578 = vmatpush.bf16.msrb.mxu3 %v2456_v42 }
  0xc0   :  { %1537 = vmatpush.bf16.msrb.mxu0 %v2256_v48  ;;  %v4062_v5 = vpop.f32.mrf.mxu0  ;;  %v1625_v48 = vld [vmem:[%s4234_s5 + $0xc8] sm:$0xff] }
  0xc1   :  { %1551 = vmatpush.bf16.msrb.mxu1 %v2320_v50  ;;  %v806_v39 = vadd.f32 %v4062_v5, %v792_v27 }
  0xc2   :  { %1565 = vmatpush.bf16.msrb.mxu2 %v2384_v51 }
  0xc3   :  { %1579 = vmatpush.bf16.msrb.mxu3 %v2448_v49  ;;  %1538 = vmatmul.bf16.vlgmr.msrb.gmra.mxu0 %v3678_v53  ;;  %v1615_v53 = vld [vmem:[%s4234_s5 + $0x78] sm:$0xff] }
  0xc4   :  { %1552 = vmatmul.bf16.vlgmr.msrb.gmra.mxu1 %v3688_v57  ;;  %v4067_v57 = vpop.f32.mrf.mxu1  ;;  %1636 = vmatpush.msra.mxu0 %v1615_v53 }
  0xc5   :  { %1566 = vmatmul.bf16.vlgmr.msrb.gmra.mxu2 %v3883_v23  ;;  %v4069_v23 = vpop.f32.mrf.mxu3  ;;  %1659 = vmatpush.msra.mxu1 %v1631_v30  ;;  %v820_v40 = vadd.f32 %v4067_v57, %v806_v39  ;;  %v1622_v57 = vld [vmem:[%s4234_s5 + $0xb0] sm:$0xff] }
  0xc6   :  { %1580 = vmatmul.bf16.vlgmr.msrb.gmra.mxu3 %v3894_v31  ;;  %2709 = vmatpush.msra.mxu2 %v1615_v53  ;;  %v1614_v31 = vld [vmem:[%s4234_s5 + $0x70] sm:$0xff]  ;;  %v794_v42 = vadd.f32 %v4069_v23, %v780_v34  ;;  %v1621_v23 = vld [vmem:[%s4234_s5 + $0xa8] sm:$0xff] }
  0xc7   :  { %1637 = vmatpush.msra.mxu0 %v1614_v31  ;;  %2725 = vmatpush.msra.mxu3 %v1631_v30 }
  0xc8   :  { %2710 = vmatpush.msra.mxu2 %v1614_v31  ;;  %v4080_v63 = vpop.f32.mrf.mxu2  ;;  %v4085_v1 = vpop.f32.mrf.mxu0  ;;  %1660 = vmatpush.msra.mxu1 %v1630_v33 }
  0xc9   :  { %1638 = vmatpush.msra.mxu0 %v1613_v61  ;;  %2726 = vmatpush.msra.mxu3 %v1630_v33  ;;  %v808_v46 = vadd.f32 %v4085_v1, %v794_v42 }
  0xca   :  { %2711 = vmatpush.msra.mxu2 %v1613_v61  ;;  %1661 = vmatpush.msra.mxu1 %v1629_v37 }
  0xcb   :  { %1639 = vmatpush.msra.mxu0 %v1612_v62  ;;  %2727 = vmatpush.msra.mxu3 %v1629_v37 }
  0xcc   :  { %2712 = vmatpush.msra.mxu2 %v1612_v62  ;;  %v4095_v6 = vpop.f32.mrf.mxu1  ;;  %1662 = vmatpush.msra.mxu1 %v1628_v38 }
  0xcd   :  { %1640 = vmatpush.msra.mxu0 %v1611_v0  ;;  %v4087_v2 = vpop.f32.mrf.mxu3  ;;  %2728 = vmatpush.msra.mxu3 %v1628_v38  ;;  %v822_v55 = vadd.f32 %v4095_v6, %v808_v46  ;;  %v1620_v6 = vld [vmem:[%s4234_s5 + $0xa0] sm:$0xff] }
  0xce   :  { %2713 = vmatpush.msra.mxu2 %v1611_v0  ;;  %1663 = vmatpush.msra.mxu1 %v1627_v41  ;;  %v1588_v0 = vperm.slane %v4180_v59, 0 }
  0xcf   :  { %1641 = vmatpush.msra.mxu0 %v1610_v3  ;;  %2729 = vmatpush.msra.mxu3 %v1627_v41 }
  0xd0   :  { %2714 = vmatpush.msra.mxu2 %v1610_v3  ;;  %v4103_v9 = vpop.f32.mrf.mxu2  ;;  %1664 = vmatpush.msra.mxu1 %v1626_v45 }
  0xd1   :  { %1642 = vmatpush.msra.mxu0 %v1609_v4  ;;  %2730 = vmatpush.msra.mxu3 %v1626_v45 }
  0xd2   :  { %2715 = vmatpush.msra.mxu2 %v1609_v4  ;;  %1665 = vmatpush.msra.mxu1 %v1625_v48 }
  0xd3   :  { %1643 = vmatpush.msra.mxu0 %v1608_v7  ;;  %2731 = vmatpush.msra.mxu3 %v1625_v48 }
  0xd4   :  { %2716 = vmatpush.msra.mxu2 %v1608_v7  ;;  %1666 = vmatpush.msra.mxu1 %v1624_v52 }
  0xd5   :  { %1644 = vmatpush.msra.mxu0 %v1607_v8  ;;  %v4115_v15 = vpop.f32.mrf.mxu3  ;;  %2732 = vmatpush.msra.mxu3 %v1624_v52 }
  0xd6   :  { %2717 = vmatpush.msra.mxu2 %v1607_v8  ;;  %1667 = vmatpush.msra.mxu1 %v1623_v58  ;;  %v1619_v8 = vld [vmem:[%s4234_s5 + $0x98] sm:$0xff]  ;;  %v850_v39 = vadd.f32 %v4115_v15, %v4103_v9 }
  0xd7   :  { %1645 = vmatpush.msra.mxu0 %v1606_v10  ;;  %2733 = vmatpush.msra.mxu3 %v1623_v58 }
  0xd8   :  { %2718 = vmatpush.msra.mxu2 %v1606_v10  ;;  %1668 = vmatpush.msra.mxu1 %v1622_v57  ;;  %v848_v10 = vadd.f32 %v4087_v2, %v4080_v63 }
  0xd9   :  { %1646 = vmatpush.msra.mxu0 %v1605_v13  ;;  %2734 = vmatpush.msra.mxu3 %v1622_v57 }
  0xda   :  { %2719 = vmatpush.msra.mxu2 %v1605_v13  ;;  %1669 = vmatpush.msra.mxu1 %v1621_v23 }
  0xdb   :  { %1647 = vmatpush.msra.mxu0 %v1604_v16  ;;  %2735 = vmatpush.msra.mxu3 %v1621_v23 }
  0xdc   :  { %2720 = vmatpush.msra.mxu2 %v1604_v16  ;;  %1670 = vmatpush.msra.mxu1 %v1620_v6 }
  0xdd   :  { %1648 = vmatpush.msra.mxu0 %v1603_v18  ;;  %2736 = vmatpush.msra.mxu3 %v1620_v6 }
  0xde   :  { %2721 = vmatpush.msra.mxu2 %v1603_v18  ;;  %1671 = vmatpush.msra.mxu1 %v1619_v8  ;;  %v1618_v18 = vld [vmem:[%s4234_s5 + $0x90] sm:$0xff] }
  0xdf   :  { %1649 = vmatpush.msra.mxu0 %v1602_v20  ;;  %2737 = vmatpush.msra.mxu3 %v1619_v8 }
  0xe0   :  { %v4108_v12 = vpop.f32.mrf.mxu0  ;;  %2722 = vmatpush.msra.mxu2 %v1602_v20  ;;  %1672 = vmatpush.msra.mxu1 %v1618_v18 }
  0xe1   :  { %v4113_v14 = vpop.f32.mrf.mxu1  ;;  %1650 = vmatpush.msra.mxu0 %v1601_v25  ;;  %2738 = vmatpush.msra.mxu3 %v1618_v18  ;;  %v862_v63 = vadd.f32 %v4108_v12, %v848_v10 }
  0xe2   :  { %2723 = vmatpush.msra.mxu2 %v1601_v25  ;;  %v1617_v25 = vld [vmem:[%s4234_s5 + $0x88] sm:$0xff] }
  0xe3   :  { %1651 = vmatpush.msra.mxu0 %v1600_v26  ;;  %1673 = vmatpush.msra.mxu1 %v1617_v25  ;;  %v876_v28 = vadd.f32 %v4113_v14, %v862_v63 }
  0xe4   :  { %2724 = vmatpush.msra.mxu2 %v1600_v26  ;;  %v1616_v26 = vld [vmem:[%s4234_s5 + $0x80] sm:$0xff]  ;;  %2739 = vmatpush.msra.mxu3 %v1617_v25 }
  0xe5   :  { %1674 = vmatpush.msra.mxu1 %v1616_v26 }
  0xe6   :  { %2740 = vmatpush.msra.mxu3 %v1616_v26 }
  0xe8   :  { %v4123_v19 = vpop.f32.mrf.mxu2  ;;  %v4128_v21 = vpop.f32.mrf.mxu0 }
  0xe9   :  { %v4130_v24 = vpop.f32.mrf.mxu1  ;;  %v4135_v11 = vpop.f32.mrf.mxu3  ;;  %v890_v12 = vadd.f32 %v4123_v19, %v876_v28  ;;  %v864_v33 = vadd.f32 %v4128_v21, %v850_v39 }
  0xeb   :  { %v904_v34 = vadd.f32 %v4135_v11, %v890_v12  ;;  %v878_v37 = vadd.f32 %v4130_v24, %v864_v33  ;;  %v1589_v11 = vperm.slane %v4180_v59, 1 }
  0xf0   :  { %v4143_v29 = vpop.f32.mrf.mxu2 }
  0xf1   :  { %v4153_v36 = vpop.f32.mrf.mxu3 }
 0x100   :  { %v1427_v35 = vpop.f32.mrf.mxu0 }
 0x101   :  { %v1441_v32 = vpop.f32.mrf.mxu1  ;;  %v1428_v43 = vadd.f32 %v1427_v35, %v820_v40  ;;  %v892_v40 = vadd.f32 %v4143_v29, %v878_v37 }
 0x103   :  { %v1442_v50 = vadd.f32 %v1441_v32, %v1428_v43 }
 0x108   :  { %v1455_v44 = vpop.f32.mrf.mxu2  ;;  %v1429_v47 = vpop.f32.mrf.mxu0 }
 0x109   :  { %v1443_v51 = vpop.f32.mrf.mxu1  ;;  %v1469_v49 = vpop.f32.mrf.mxu3  ;;  %v1456_v54 = vadd.f32 %v1455_v44, %v1442_v50  ;;  %v1430_v56 = vadd.f32 %v1429_v47, %v822_v55  ;;  %v906_v44 = vadd.f32 %v4153_v36, %v892_v40 }
 0x10b   :  { %v1470_v60 = vadd.f32 %v1469_v49, %v1456_v54  ;;  %v1444_v31 = vadd.f32 %v1443_v51, %v1430_v56 }
 0x110   :  { %v1457_v5 = vpop.f32.mrf.mxu2 }
 0x111   :  { %v1458_v1 = vadd.f32 %v1457_v5, %v1444_v31  ;;  %v1471_v4 = vpop.f32.mrf.mxu3 }
 0x113   :  { %v1472_v13 = vadd.f32 %v1471_v4, %v1458_v1 }
 0x120   :  { %v1483_v53 = vpop.f32.mrf.mxu0 }
 0x121   :  { %v1484_v61 = vadd.f32 %v1483_v53, %v1470_v60  ;;  %v1497_v62 = vpop.f32.mrf.mxu1  ;;  %v2741_v53 = vld [vmem:[%s4233_s6] ss:$0 sm:$0xff] }
 0x123   :  { %v1498_v3 = vadd.f32 %v1497_v62, %v1484_v61 }
 0x125   :  { %v1592_v7 = vadd.f32 %v1588_v0, %v1498_v3 }
 0x127   :  { %v1596_v16 = vmax.f32 %v1592_v7, 0.0 }
 0x128   :  { %v1485_v17 = vpop.f32.mrf.mxu0  ;;  %v1511_v30 = vpop.f32.mrf.mxu2 }
 0x129   :  { %v1486_v20 = vadd.f32 %v1485_v17, %v1472_v13  ;;  %1652 = vmatmul.f32.vlgmr.msra.gmra.mxu0 %v1596_v16  ;;  %v1499_v22 = vpop.f32.mrf.mxu1  ;;  %v1525_v32 = vpop.f32.mrf.mxu3  ;;  %v1512_v38 = vadd.f32 %v1511_v30, %v904_v34 }
 0x12b   :  { %v1500_v2 = vadd.f32 %v1499_v22, %v1486_v20  ;;  %v1526_v14 = vadd.f32 %v1525_v32, %v1512_v38 }
 0x12d   :  { %v1594_v27 = vadd.f32 %v1588_v0, %v1500_v2 }
 0x12f   :  { %v1598_v35 = vmax.f32 %v1594_v27, 0.0 }
 0x130   :  { %v1513_v41 = vpop.f32.mrf.mxu2 }
 0x131   :  { %1655 = vmatmul.f32.vlgmr.msra.gmra.mxu2 %v1598_v35  ;;  %v1527_v42 = vpop.f32.mrf.mxu3  ;;  %v1514_v15 = vadd.f32 %v1513_v41, %v906_v44 }
 0x133   :  { %v1528_v47 = vadd.f32 %v1527_v42, %v1514_v15 }
 0x140   :  { %v1539_v43 = vpop.f32.mrf.mxu0 }
 0x141   :  { %v1540_v45 = vadd.f32 %v1539_v43, %v1526_v14  ;;  %v1553_v9 = vpop.f32.mrf.mxu1 }
 0x143   :  { %v1554_v19 = vadd.f32 %v1553_v9, %v1540_v45 }
 0x148   :  { %v1567_v46 = vpop.f32.mrf.mxu2  ;;  %v1541_v24 = vpop.f32.mrf.mxu0 }
 0x149   :  { %v1568_v21 = vadd.f32 %v1567_v46, %v1554_v19  ;;  %v1581_v48 = vpop.f32.mrf.mxu3  ;;  %v1542_v51 = vadd.f32 %v1541_v24, %v1528_v47  ;;  %v1555_v49 = vpop.f32.mrf.mxu1 }
 0x14b   :  { %v1582_v50 = vadd.f32 %v1581_v48, %v1568_v21  ;;  %v1556_v55 = vadd.f32 %v1555_v49, %v1542_v51 }
 0x14d   :  { %v1593_v29 = vadd.f32 %v1589_v11, %v1582_v50 }
 0x14f   :  { %v1597_v52 = vmax.f32 %v1593_v29, 0.0 }
 0x150   :  { %v1569_v54 = vpop.f32.mrf.mxu2 }
 0x151   :  { %v1570_v56 = vadd.f32 %v1569_v54, %v1556_v55  ;;  %1675 = vmatmul.f32.vlgmr.msra.gmra.mxu1 %v1597_v52  ;;  %v1583_v36 = vpop.f32.mrf.mxu3 }
 0x153   :  { %v1584_v58 = vadd.f32 %v1583_v36, %v1570_v56 }
 0x155   :  { %v1595_v60 = vadd.f32 %v1589_v11, %v1584_v58 }
 0x157   :  { %v1599_v5 = vmax.f32 %v1595_v60, 0.0 }
 0x159   :  { %1678 = vmatmul.f32.vlgmr.msra.gmra.mxu3 %v1599_v5 }
 0x1a6   :  { %v1653_v59 = vpop.f32.mrf.mxu0 }
 0x1a7   :  { %v1654_v57 = vadd.f32 %v2741_v53, %v1653_v59 }
 0x1b4   :  { %v1656_v61 = vpop.f32.mrf.mxu2 }
 0x1b5   :  { %v1657_v62 = vadd.f32 %v2741_v53, %v1656_v61 }
 0x1ce   :  { %v1676_v23 = vpop.f32.mrf.mxu1 }
 0x1cf   :  { %v1677_v31 = vadd.f32 %v1676_v23, %v1654_v57 }
 0x1d1   :  { %1683 = vst.msk [vmem:[%s4236_s7] sm:$0xff] %vm1682_vm0, %v1677_v31 }
 0x1dc   :  { %v1679_v0 = vpop.f32.mrf.mxu3 }
 0x1dd   :  { %v1680_v1 = vadd.f32 %v1679_v0, %v1657_v62 }
 0x1df   :  { %1684 = vst.msk [vmem:[%s4236_s7 + $0x8] sm:$0xff] %vm1682_vm0, %v1680_v1 }

</bundles_post_ra>
